<compile_context>
chip_gen: v5e
topology: v5e:2x2
jax: 0.10.0
libtpu: 0.0.40
codegen_flags: <defaults>
</compile_context>

<pallas_src>
import jax
import jax.numpy as jnp
from jax.experimental import pallas as pl
from jax.experimental.pallas import tpu as pltpu


def _pick_row_tile(H, requested):
    tr = max(1, min(requested, H))
    while H % tr != 0:
        tr -= 1
    return tr


def dense_layer_kernel(x_top_ref, x_mid_ref, x_bot_ref, s1_ref, b1_ref,
                       w1_ref, b2_ref, w2_ref, y_ref, pad_ref):
    TR, W, C = x_mid_ref.shape[1], x_mid_ref.shape[2], x_mid_ref.shape[3]
    Cm = w1_ref.shape[1]          # 4 * growth_rate
    G = w2_ref.shape[1]           # growth_rate

    # Row slab with a 1-row halo on each side: (TR+2, W, C).  Halo rows are
    # clamped copies at the image border; their h2 rows are zeroed below so
    # they behave like the 3x3 conv's zero padding.
    x_slab = jnp.concatenate(
        [x_top_ref[0], x_mid_ref[0], x_bot_ref[0]], axis=0)          # f32

    # BN1 (folded) + ReLU1, then 1x1 conv as a channel matmul.
    # bf16 MXU operands, f32 accumulation; BN2's scale is folded into W1.
    h = jnp.maximum(x_slab * s1_ref[0] + b1_ref[0], 0.0)             # (TR+2, W, C)
    hm = jnp.dot(h.reshape((TR + 2) * W, C).astype(jnp.bfloat16), w1_ref[...],
                 preferred_element_type=jnp.float32)                 # ((TR+2)*W, Cm)
    h2 = jnp.maximum(hm + b2_ref[...], 0.0)                          # BN2 shift + ReLU
    h2 = h2.reshape(TR + 2, W, Cm).astype(jnp.bfloat16)              # bf16 from here on

    # Column padding done in registers -> one aligned full-slab store into the
    # bf16 scratch (no masked single-column border stores per step).
    zcol = jnp.zeros((TR + 2, 1, Cm), jnp.bfloat16)
    pad_ref[...] = jnp.concatenate([zcol, h2, zcol], axis=1)         # (TR+2, W+2, Cm)

    # Vertical zero padding: only the image-border tiles zero their halo row.
    i = pl.program_id(1)

    @pl.when(i == 0)
    def _():
        pad_ref[0:1, :, :] = jnp.zeros((1, W + 2, Cm), jnp.bfloat16)

    @pl.when(i == pl.num_programs(1) - 1)
    def _():
        pad_ref[TR + 1:TR + 2, :, :] = jnp.zeros((1, W + 2, Cm), jnp.bfloat16)

    # im2col in bf16: one [TR*W, 9*Cm] patch matrix and a single deep-K matmul
    # (K = 9*Cm) instead of 9 shallow K = Cm matmuls.
    cols = []
    for ky in range(3):
        for kx in range(3):
            win = pad_ref[ky:ky + TR, kx:kx + W, :]                  # (TR, W, Cm) bf16
            cols.append(win.reshape(TR * W, Cm))
    patches = jnp.concatenate(cols, axis=-1)                         # (TR*W, 9*Cm) bf16
    y = jnp.dot(patches, w2_ref[...],
                preferred_element_type=jnp.float32)                  # (TR*W, G) f32

    # Only the new-feature slab is written back (no x copy through the output).
    y_ref[0] = y.reshape(TR, W, G).astype(y_ref.dtype)


def dense_layer_conv_nhwc(x_nhwc, params, *, row_tile=8, out_dtype=jnp.float32):
    """Pallas NHWC forward of BN-ReLU-1x1-BN-ReLU-3x3.  Returns only y [N,H,W,G]."""
    s1, b1, w1, b2, w2 = params
    N, H, W, C = x_nhwc.shape
    Cm = w1.shape[1]
    G = w2.shape[1]
    TR = _pick_row_tile(H, row_tile)
    RT = H // TR

    flops = N * (2 * H * W * C * Cm + 2 * H * W * (9 * Cm) * G)
    bytes_accessed = int(N * (H + 2 * RT) * W * C * 4               # x reads (+ halo rows)
                         + N * H * W * G * jnp.dtype(out_dtype).itemsize
                         + w1.size * 2 + w2.size * 2
                         + (s1.size + b1.size + b2.size) * 4)

    return pl.pallas_call(
        dense_layer_kernel,
        out_shape=jax.ShapeDtypeStruct((N, H, W, G), out_dtype),
        grid_spec=pltpu.PrefetchScalarGridSpec(
            num_scalar_prefetch=0,
            grid=(N, RT),
            in_specs=[
                # top halo row (clamped at the image border; zeroed in-kernel there)
                pl.BlockSpec((1, 1, W, C),
                             lambda n, i: (n, jnp.maximum(i * TR - 1, 0), 0, 0)),
                # this tile's TR rows
                pl.BlockSpec((1, TR, W, C), lambda n, i: (n, i, 0, 0)),
                # bottom halo row (clamped at the image border; zeroed in-kernel there)
                pl.BlockSpec((1, 1, W, C),
                             lambda n, i: (n, jnp.minimum((i + 1) * TR, H - 1), 0, 0)),
                pl.BlockSpec((1, C), lambda n, i: (0, 0)),           # bn1 scale
                pl.BlockSpec((1, C), lambda n, i: (0, 0)),           # bn1 shift
                pl.BlockSpec((C, Cm), lambda n, i: (0, 0)),          # W1 bf16 (bn2 scale folded)
                pl.BlockSpec((1, Cm), lambda n, i: (0, 0)),          # bn2 shift
                pl.BlockSpec((9 * Cm, G), lambda n, i: (0, 0)),      # W2 flat [9*Cm, G] bf16
            ],
            out_specs=pl.BlockSpec((1, TR, W, G), lambda n, i: (n, i, 0, 0)),
            scratch_shapes=[pltpu.VMEM((TR + 2, W + 2, Cm), jnp.bfloat16)],
        ),
        compiler_params=pltpu.CompilerParams(
            dimension_semantics=("parallel", "parallel"),
            vmem_limit_bytes=48 * 1024 * 1024),
        cost_estimate=pl.CostEstimate(
            flops=flops, transcendentals=0, bytes_accessed=bytes_accessed),
    )(x_nhwc, x_nhwc, x_nhwc, s1, b1, w1, b2, w2)


def dense_layer_forward(x_nchw, params, *, row_tile=8):
    """NCHW adapter matching the PyTorch module: cat([x, branch(x)], dim=1)."""
    x_nhwc = jnp.transpose(x_nchw, (0, 2, 3, 1)).astype(jnp.float32)
    y_nhwc = dense_layer_conv_nhwc(x_nhwc, params, row_tile=row_tile)
    y_nchw = jnp.transpose(y_nhwc, (0, 3, 1, 2))
    return jnp.concatenate([x_nchw.astype(jnp.float32), y_nchw], axis=1)


def init_params(key, num_channels, growth_rate):
    """Deterministic synthetic parameters, mirroring the PyTorch module shapes."""
    C, Cm, G = num_channels, 4 * growth_rate, growth_rate
    eps = 1e-5
    ks = jax.random.split(key, 10)

    # BatchNorm2d(num_channels): gamma, beta, running_mean, running_var
    g1 = jax.random.uniform(ks[0], (C,), jnp.float32, 0.5, 1.5)
    be1 = 0.1 * jax.random.normal(ks[1], (C,), jnp.float32)
    m1 = 0.1 * jax.random.normal(ks[2], (C,), jnp.float32)
    v1 = jax.random.uniform(ks[3], (C,), jnp.float32, 0.5, 1.5)
    # BatchNorm2d(4*growth_rate)
    g2 = jax.random.uniform(ks[4], (Cm,), jnp.float32, 0.5, 1.5)
    be2 = 0.1 * jax.random.normal(ks[5], (Cm,), jnp.float32)
    m2 = 0.1 * jax.random.normal(ks[6], (Cm,), jnp.float32)
    v2 = jax.random.uniform(ks[7], (Cm,), jnp.float32, 0.5, 1.5)
    # Conv weights in PyTorch OIHW layout.
    w1_pt = 0.1 * jax.random.normal(ks[8], (Cm, C, 1, 1), jnp.float32)
    w2_pt = 0.1 * jax.random.normal(ks[9], (G, Cm, 3, 3), jnp.float32)

    # Fold BN into per-channel scale/shift (inference mode).
    s1 = g1 / jnp.sqrt(v1 + eps)
    sh1 = be1 - m1 * s1
    s2 = g2 / jnp.sqrt(v2 + eps)
    sh2 = be2 - m2 * s2

    # Kernel layouts.  BN2's scale is folded into the 1x1 conv weight:
    #   relu((h @ W1) * s2 + b2) == relu(h @ (W1 * diag(s2)) + b2).
    w1_k = (jnp.transpose(w1_pt[:, :, 0, 0], (1, 0)) * s2[None, :]).astype(jnp.bfloat16)
    # W2 flattened to [9*Cm, G] with tap order (ky, kx), matching the im2col columns.
    w2_k = jnp.transpose(w2_pt, (2, 3, 1, 0)).reshape(9 * Cm, G).astype(jnp.bfloat16)

    return (s1.reshape(1, C), sh1.reshape(1, C), w1_k,
            sh2.reshape(1, Cm), w2_k)


def ref_forward(x_nchw, params):
    """Pure-JAX reference of the fused forward (eval-mode BN, same bf16 operands)."""
    s1, b1, w1, b2, w2 = params
    Cm, G = w1.shape[1], w2.shape[1]
    x = jnp.transpose(x_nchw, (0, 2, 3, 1)).astype(jnp.float32)
    h = jnp.maximum(x * s1[0] + b1[0], 0.0)
    hm = jnp.einsum('nhwc,cm->nhwm', h.astype(jnp.bfloat16), w1,
                    preferred_element_type=jnp.float32)
    h2 = jnp.maximum(hm + b2[0], 0.0)
    w2_hwio = w2.reshape(3, 3, Cm, G)
    y = jax.lax.conv_general_dilated(
        h2.astype(jnp.bfloat16), w2_hwio, window_strides=(1, 1),
        padding=((1, 1), (1, 1)),
        dimension_numbers=('NHWC', 'HWIO', 'NHWC'),
        preferred_element_type=jnp.float32)
    out = jnp.concatenate([x, y], axis=-1)
    return jnp.transpose(out, (0, 3, 1, 2))


if __name__ == "__main__":
    num_channels, growth_rate = 4, 8
    N, H, W = 2, 16, 16

    key = jax.random.PRNGKey(0)
    kx, kp = jax.random.split(key)
    x = jax.random.normal(kx, (N, num_channels, H, W), jnp.float32)
    params = init_params(kp, num_channels, growth_rate)

    out = jax.block_until_ready(dense_layer_forward(x, params))
    assert out.shape == (N, num_channels + growth_rate, H, W), out.shape

    ref = jax.block_until_ready(ref_forward(x, params))
    assert jnp.allclose(out, ref, atol=5e-3, rtol=5e-3), \
        float(jnp.max(jnp.abs(out - ref)))

    print("KERNEL_OK")
</pallas_src>

<mosaic_0001>
module attributes {stable_mosaic.version = 11 : i64} {
  func.func @dense_layer_kernel(%arg0: i32, %arg1: i32, %arg2: memref<1x1x16x4xf32, #tpu.memory_space<vmem>>, %arg3: memref<1x8x16x4xf32, #tpu.memory_space<vmem>>, %arg4: memref<1x1x16x4xf32, #tpu.memory_space<vmem>>, %arg5: memref<1x4xf32, #tpu.memory_space<vmem>>, %arg6: memref<1x4xf32, #tpu.memory_space<vmem>>, %arg7: memref<4x32xbf16, #tpu.memory_space<vmem>>, %arg8: memref<1x32xf32, #tpu.memory_space<vmem>>, %arg9: memref<288x8xbf16, #tpu.memory_space<vmem>>, %arg10: memref<1x8x16x8xf32, #tpu.memory_space<vmem>>, %arg11: memref<10x18x32xbf16, #tpu.memory_space<vmem>>) attributes {dimension_semantics = [#tpu.dimension_semantics<parallel>, #tpu.dimension_semantics<parallel>], iteration_bounds = array<i64: 2, 2>, scalar_prefetch = 0 : i64, scratch_operands = 1 : i64, tpu.core_type = #tpu.core_type<tc>, window_params = [{transform_indices = @transform_0, window_bounds = array<i64: 1, 1, 16, 4>}, {transform_indices = @transform_1, window_bounds = array<i64: 1, 8, 16, 4>}, {transform_indices = @transform_2, window_bounds = array<i64: 1, 1, 16, 4>}, {pipeline_mode = #tpu.pipeline_mode<synchronous>, transform_indices = @transform_3, window_bounds = array<i64: 1, 4>}, {pipeline_mode = #tpu.pipeline_mode<synchronous>, transform_indices = @transform_4, window_bounds = array<i64: 1, 4>}, {pipeline_mode = #tpu.pipeline_mode<synchronous>, transform_indices = @transform_5, window_bounds = array<i64: 4, 32>}, {pipeline_mode = #tpu.pipeline_mode<synchronous>, transform_indices = @transform_6, window_bounds = array<i64: 1, 32>}, {pipeline_mode = #tpu.pipeline_mode<synchronous>, transform_indices = @transform_7, window_bounds = array<i64: 288, 8>}, {transform_indices = @transform_8, window_bounds = array<i64: 1, 8, 16, 8>}]} {
    %c0 = arith.constant 0 : index
    %c0_0 = arith.constant 0 : index
    %c0_1 = arith.constant 0 : index
    %c0_2 = arith.constant 0 : index
    %0 = vector.load %arg2[%c0, %c0_0, %c0_1, %c0_2] : memref<1x1x16x4xf32, #tpu.memory_space<vmem>>, vector<1x1x16x4xf32>
    %1 = vector.shape_cast %0 : vector<1x1x16x4xf32> to vector<1x16x4xf32>
    %c0_3 = arith.constant 0 : index
    %c0_4 = arith.constant 0 : index
    %c0_5 = arith.constant 0 : index
    %c0_6 = arith.constant 0 : index
    %2 = vector.load %arg3[%c0_3, %c0_4, %c0_5, %c0_6] : memref<1x8x16x4xf32, #tpu.memory_space<vmem>>, vector<1x8x16x4xf32>
    %3 = vector.shape_cast %2 : vector<1x8x16x4xf32> to vector<8x16x4xf32>
    %c0_7 = arith.constant 0 : index
    %c0_8 = arith.constant 0 : index
    %c0_9 = arith.constant 0 : index
    %c0_10 = arith.constant 0 : index
    %4 = vector.load %arg4[%c0_7, %c0_8, %c0_9, %c0_10] : memref<1x1x16x4xf32, #tpu.memory_space<vmem>>, vector<1x1x16x4xf32>
    %5 = vector.shape_cast %4 : vector<1x1x16x4xf32> to vector<1x16x4xf32>
    %6 = tpu.concatenate %1, %3, %5 in 0 : vector<1x16x4xf32>, vector<8x16x4xf32>, vector<1x16x4xf32> -> vector<10x16x4xf32>
    %c0_11 = arith.constant 0 : index
    %c0_12 = arith.constant 0 : index
    %7 = vector.load %arg5[%c0_11, %c0_12] : memref<1x4xf32, #tpu.memory_space<vmem>>, vector<1x4xf32>
    %8 = vector.shape_cast %7 : vector<1x4xf32> to vector<4xf32>
    %9 = vector.shape_cast %8 : vector<4xf32> to vector<1x1x4xf32>
    %10 = vector.broadcast %9 : vector<1x1x4xf32> to vector<10x16x4xf32>
    %11 = arith.mulf %6, %10 : vector<10x16x4xf32>
    %c0_13 = arith.constant 0 : index
    %c0_14 = arith.constant 0 : index
    %12 = vector.load %arg6[%c0_13, %c0_14] : memref<1x4xf32, #tpu.memory_space<vmem>>, vector<1x4xf32>
    %13 = vector.shape_cast %12 : vector<1x4xf32> to vector<4xf32>
    %14 = vector.shape_cast %13 : vector<4xf32> to vector<1x1x4xf32>
    %15 = vector.broadcast %14 : vector<1x1x4xf32> to vector<10x16x4xf32>
    %16 = arith.addf %11, %15 : vector<10x16x4xf32>
    %cst = arith.constant 0.000000e+00 : f32
    %17 = vector.broadcast %cst : f32 to vector<10x16x4xf32>
    %18 = arith.maximumf %16, %17 : vector<10x16x4xf32>
    %19 = vector.shape_cast %18 : vector<10x16x4xf32> to vector<160x4xf32>
    %20 = arith.truncf %19 : vector<160x4xf32> to vector<160x4xbf16>
    %c0_15 = arith.constant 0 : index
    %c0_16 = arith.constant 0 : index
    %21 = vector.load %arg7[%c0_15, %c0_16] : memref<4x32xbf16, #tpu.memory_space<vmem>>, vector<4x32xbf16>
    %cst_17 = arith.constant dense<0.000000e+00> : vector<160x32xf32>
    %22 = tpu.matmul %20, %21, %cst_17 {dimension_numbers = #tpu.dot_dimension_numbers<[1], [0], [0], [1], [0, 0, 1, 1], [], []>} : vector<160x4xbf16>, vector<4x32xbf16>, vector<160x32xf32> -> vector<160x32xf32>
    %c0_18 = arith.constant 0 : index
    %c0_19 = arith.constant 0 : index
    %23 = vector.load %arg8[%c0_18, %c0_19] : memref<1x32xf32, #tpu.memory_space<vmem>>, vector<1x32xf32>
    %24 = vector.broadcast %23 : vector<1x32xf32> to vector<160x32xf32>
    %25 = arith.addf %22, %24 : vector<160x32xf32>
    %cst_20 = arith.constant 0.000000e+00 : f32
    %26 = vector.broadcast %cst_20 : f32 to vector<160x32xf32>
    %27 = arith.maximumf %25, %26 : vector<160x32xf32>
    %28 = vector.shape_cast %27 : vector<160x32xf32> to vector<10x16x32xf32>
    %29 = arith.truncf %28 : vector<10x16x32xf32> to vector<10x16x32xbf16>
    %cst_21 = arith.constant 0.000000e+00 : bf16
    %30 = vector.broadcast %cst_21 : bf16 to vector<10x1x32xbf16>
    %31 = tpu.concatenate %30, %29, %30 in 1 : vector<10x1x32xbf16>, vector<10x16x32xbf16>, vector<10x1x32xbf16> -> vector<10x18x32xbf16>
    %c0_22 = arith.constant 0 : index
    %c0_23 = arith.constant 0 : index
    %c0_24 = arith.constant 0 : index
    %32 = vector.load %arg11[%c0_22, %c0_23, %c0_24] : memref<10x18x32xbf16, #tpu.memory_space<vmem>>, vector<10x18x32xbf16>
    tpu.vector_store %arg11[%c0_22, %c0_23, %c0_24], %31 {strides = array<i32>} : memref<10x18x32xbf16, #tpu.memory_space<vmem>>, vector<10x18x32xbf16>,
    %c0_i32 = arith.constant 0 : i32
    %33 = arith.cmpi eq, %arg1, %c0_i32 : i32
    %34 = arith.extui %33 : i1 to i32
    %c0_i32_25 = arith.constant 0 : i32
    %35 = arith.cmpi ne, %34, %c0_i32_25 : i32
    scf.if %35 {
      %cst_59 = arith.constant 0.000000e+00 : bf16
      %64 = vector.broadcast %cst_59 : bf16 to vector<1x18x32xbf16>
      %c0_60 = arith.constant 0 : index
      %c0_61 = arith.constant 0 : index
      %c0_62 = arith.constant 0 : index
      %65 = vector.load %arg11[%c0_60, %c0_61, %c0_62] : memref<10x18x32xbf16, #tpu.memory_space<vmem>>, vector<1x18x32xbf16>
      tpu.vector_store %arg11[%c0_60, %c0_61, %c0_62], %64 {strides = array<i32>} : memref<10x18x32xbf16, #tpu.memory_space<vmem>>, vector<1x18x32xbf16>,
    } else {
    }
    %c1_i32 = arith.constant 1 : i32
    %36 = arith.cmpi eq, %arg1, %c1_i32 : i32
    %37 = arith.extui %36 : i1 to i32
    %c0_i32_26 = arith.constant 0 : i32
    %38 = arith.cmpi ne, %37, %c0_i32_26 : i32
    scf.if %38 {
      %cst_59 = arith.constant 0.000000e+00 : bf16
      %64 = vector.broadcast %cst_59 : bf16 to vector<1x18x32xbf16>
      %c9 = arith.constant 9 : index
      %c0_60 = arith.constant 0 : index
      %c0_61 = arith.constant 0 : index
      %65 = vector.load %arg11[%c9, %c0_60, %c0_61] : memref<10x18x32xbf16, #tpu.memory_space<vmem>>, vector<1x18x32xbf16>
      tpu.vector_store %arg11[%c9, %c0_60, %c0_61], %64 {strides = array<i32>} : memref<10x18x32xbf16, #tpu.memory_space<vmem>>, vector<1x18x32xbf16>,
    } else {
    }
    %c0_27 = arith.constant 0 : index
    %c0_28 = arith.constant 0 : index
    %c0_29 = arith.constant 0 : index
    %39 = vector.load %arg11[%c0_27, %c0_28, %c0_29] : memref<10x18x32xbf16, #tpu.memory_space<vmem>>, vector<8x16x32xbf16>
    %40 = vector.shape_cast %39 : vector<8x16x32xbf16> to vector<128x32xbf16>
    %c0_30 = arith.constant 0 : index
    %c1 = arith.constant 1 : index
    %c0_31 = arith.constant 0 : index
    %41 = vector.load %arg11[%c0_30, %c1, %c0_31] : memref<10x18x32xbf16, #tpu.memory_space<vmem>>, vector<8x16x32xbf16>
    %42 = vector.shape_cast %41 : vector<8x16x32xbf16> to vector<128x32xbf16>
    %c0_32 = arith.constant 0 : index
    %c2 = arith.constant 2 : index
    %c0_33 = arith.constant 0 : index
    %43 = vector.load %arg11[%c0_32, %c2, %c0_33] : memref<10x18x32xbf16, #tpu.memory_space<vmem>>, vector<8x16x32xbf16>
    %44 = vector.shape_cast %43 : vector<8x16x32xbf16> to vector<128x32xbf16>
    %c1_34 = arith.constant 1 : index
    %c0_35 = arith.constant 0 : index
    %c0_36 = arith.constant 0 : index
    %45 = vector.load %arg11[%c1_34, %c0_35, %c0_36] : memref<10x18x32xbf16, #tpu.memory_space<vmem>>, vector<8x16x32xbf16>
    %46 = vector.shape_cast %45 : vector<8x16x32xbf16> to vector<128x32xbf16>
    %c1_37 = arith.constant 1 : index
    %c1_38 = arith.constant 1 : index
    %c0_39 = arith.constant 0 : index
    %47 = vector.load %arg11[%c1_37, %c1_38, %c0_39] : memref<10x18x32xbf16, #tpu.memory_space<vmem>>, vector<8x16x32xbf16>
    %48 = vector.shape_cast %47 : vector<8x16x32xbf16> to vector<128x32xbf16>
    %c1_40 = arith.constant 1 : index
    %c2_41 = arith.constant 2 : index
    %c0_42 = arith.constant 0 : index
    %49 = vector.load %arg11[%c1_40, %c2_41, %c0_42] : memref<10x18x32xbf16, #tpu.memory_space<vmem>>, vector<8x16x32xbf16>
    %50 = vector.shape_cast %49 : vector<8x16x32xbf16> to vector<128x32xbf16>
    %c2_43 = arith.constant 2 : index
    %c0_44 = arith.constant 0 : index
    %c0_45 = arith.constant 0 : index
    %51 = vector.load %arg11[%c2_43, %c0_44, %c0_45] : memref<10x18x32xbf16, #tpu.memory_space<vmem>>, vector<8x16x32xbf16>
    %52 = vector.shape_cast %51 : vector<8x16x32xbf16> to vector<128x32xbf16>
    %c2_46 = arith.constant 2 : index
    %c1_47 = arith.constant 1 : index
    %c0_48 = arith.constant 0 : index
    %53 = vector.load %arg11[%c2_46, %c1_47, %c0_48] : memref<10x18x32xbf16, #tpu.memory_space<vmem>>, vector<8x16x32xbf16>
    %54 = vector.shape_cast %53 : vector<8x16x32xbf16> to vector<128x32xbf16>
    %c2_49 = arith.constant 2 : index
    %c2_50 = arith.constant 2 : index
    %c0_51 = arith.constant 0 : index
    %55 = vector.load %arg11[%c2_49, %c2_50, %c0_51] : memref<10x18x32xbf16, #tpu.memory_space<vmem>>, vector<8x16x32xbf16>
    %56 = vector.shape_cast %55 : vector<8x16x32xbf16> to vector<128x32xbf16>
    %57 = tpu.concatenate %40, %42, %44, %46, %48, %50, %52, %54, %56 in 1 : vector<128x32xbf16>, vector<128x32xbf16>, vector<128x32xbf16>, vector<128x32xbf16>, vector<128x32xbf16>, vector<128x32xbf16>, vector<128x32xbf16>, vector<128x32xbf16>, vector<128x32xbf16> -> vector<128x288xbf16>
    %c0_52 = arith.constant 0 : index
    %c0_53 = arith.constant 0 : index
    %58 = vector.load %arg9[%c0_52, %c0_53] : memref<288x8xbf16, #tpu.memory_space<vmem>>, vector<288x8xbf16>
    %cst_54 = arith.constant dense<0.000000e+00> : vector<128x8xf32>
    %59 = tpu.matmul %57, %58, %cst_54 {dimension_numbers = #tpu.dot_dimension_numbers<[1], [0], [0], [1], [0, 0, 1, 1], [], []>} : vector<128x288xbf16>, vector<288x8xbf16>, vector<128x8xf32> -> vector<128x8xf32>
    %60 = vector.shape_cast %59 : vector<128x8xf32> to vector<8x16x8xf32>
    %c0_55 = arith.constant 0 : index
    %c0_56 = arith.constant 0 : index
    %c0_57 = arith.constant 0 : index
    %c0_58 = arith.constant 0 : index
    %61 = vector.load %arg10[%c0_55, %c0_56, %c0_57, %c0_58] : memref<1x8x16x8xf32, #tpu.memory_space<vmem>>, vector<1x8x16x8xf32>
    %62 = vector.shape_cast %61 : vector<1x8x16x8xf32> to vector<8x16x8xf32>
    %63 = vector.shape_cast %60 : vector<8x16x8xf32> to vector<1x8x16x8xf32>
    tpu.vector_store %arg10[%c0_55, %c0_56, %c0_57, %c0_58], %63 {strides = array<i32>} : memref<1x8x16x8xf32, #tpu.memory_space<vmem>>, vector<1x8x16x8xf32>,
    return
  }
  func.func @transform_0(%arg0: i32, %arg1: i32) -> (i32, i32, i32, i32) {
    %c8_i32 = arith.constant 8 : i32
    %0 = arith.muli %arg1, %c8_i32 : i32
    %c1_i32 = arith.constant 1 : i32
    %1 = arith.subi %0, %c1_i32 : i32
    %c0_i32 = arith.constant 0 : i32
    %2 = arith.maxsi %1, %c0_i32 : i32
    %c0_i32_0 = arith.constant 0 : i32
    %c0_i32_1 = arith.constant 0 : i32
    %c0_i32_2 = arith.constant 0 : i32
    return %arg0, %2, %c0_i32_0, %c0_i32_1 : i32, i32, i32, i32
  }
  func.func @transform_1(%arg0: i32, %arg1: i32) -> (i32, i32, i32, i32) {
    %c0_i32 = arith.constant 0 : i32
    %c0_i32_0 = arith.constant 0 : i32
    %c0_i32_1 = arith.constant 0 : i32
    return %arg0, %arg1, %c0_i32, %c0_i32_0 : i32, i32, i32, i32
  }
  func.func @transform_2(%arg0: i32, %arg1: i32) -> (i32, i32, i32, i32) {
    %c1_i32 = arith.constant 1 : i32
    %0 = arith.addi %arg1, %c1_i32 : i32
    %c8_i32 = arith.constant 8 : i32
    %1 = arith.muli %0, %c8_i32 : i32
    %c15_i32 = arith.constant 15 : i32
    %2 = arith.minsi %1, %c15_i32 : i32
    %c0_i32 = arith.constant 0 : i32
    %c0_i32_0 = arith.constant 0 : i32
    %c0_i32_1 = arith.constant 0 : i32
    return %arg0, %2, %c0_i32, %c0_i32_0 : i32, i32, i32, i32
  }
  func.func @transform_3(%arg0: i32, %arg1: i32) -> (i32, i32) {
    %c0_i32 = arith.constant 0 : i32
    %c0_i32_0 = arith.constant 0 : i32
    %c0_i32_1 = arith.constant 0 : i32
    return %c0_i32, %c0_i32_0 : i32, i32
  }
  func.func @transform_4(%arg0: i32, %arg1: i32) -> (i32, i32) {
    %c0_i32 = arith.constant 0 : i32
    %c0_i32_0 = arith.constant 0 : i32
    %c0_i32_1 = arith.constant 0 : i32
    return %c0_i32, %c0_i32_0 : i32, i32
  }
  func.func @transform_5(%arg0: i32, %arg1: i32) -> (i32, i32) {
    %c0_i32 = arith.constant 0 : i32
    %c0_i32_0 = arith.constant 0 : i32
    %c0_i32_1 = arith.constant 0 : i32
    return %c0_i32, %c0_i32_0 : i32, i32
  }
  func.func @transform_6(%arg0: i32, %arg1: i32) -> (i32, i32) {
    %c0_i32 = arith.constant 0 : i32
    %c0_i32_0 = arith.constant 0 : i32
    %c0_i32_1 = arith.constant 0 : i32
    return %c0_i32, %c0_i32_0 : i32, i32
  }
  func.func @transform_7(%arg0: i32, %arg1: i32) -> (i32, i32) {
    %c0_i32 = arith.constant 0 : i32
    %c0_i32_0 = arith.constant 0 : i32
    %c0_i32_1 = arith.constant 0 : i32
    return %c0_i32, %c0_i32_0 : i32, i32
  }
  func.func @transform_8(%arg0: i32, %arg1: i32) -> (i32, i32, i32, i32) {
    %c0_i32 = arith.constant 0 : i32
    %c0_i32_0 = arith.constant 0 : i32
    %c0_i32_1 = arith.constant 0 : i32
    return %arg0, %arg1, %c0_i32, %c0_i32_0 : i32, i32, i32, i32
  }
}

</mosaic_0001>

<bundles_post_ra>
// kernel: tpu_custom_call.1
= control target key start
LH: loop header
LB: loop body
LE: loop exit
PB: predicated region body
PF: predicated region fallthrough
CT: control target
= control target key end

     0   :  { %s3341_s27 = smov 0   ;;  %s3343_s28 = smov 0   ;;  %s4239_s0 = inlined_call_operand.vmem [shape: f32[2,16,16,4], index: 0, kind: input, shape index: {}]   ;;  %s4240_s1 = inlined_call_operand.vmem [shape: f32[2,16,16,4], index: 1, kind: input, shape index: {}]   ;;  %s4241_s2 = inlined_call_operand.vmem [shape: f32[2,16,16,4], index: 2, kind: input, shape index: {}]   ;;  %s4242_s3 = inlined_call_operand.vmem [shape: f32[1,4], index: 3, kind: input, shape index: {}]   ;;  %s4243_s4 = inlined_call_operand.vmem [shape: f32[1,4], index: 4, kind: input, shape index: {}]   ;;  %s4244_s5 = inlined_call_operand.vmem [shape: bf16[4,32], index: 5, kind: input, shape index: {}]   ;;  %s4245_s6 = inlined_call_operand.vmem [shape: f32[1,32], index: 6, kind: input, shape index: {}]   ;;  %s4246_s7 = inlined_call_operand.vmem [shape: bf16[288,8], index: 7, kind: input, shape index: {}]   ;;  %s4247_s8 = inlined_call_operand.vmem [shape: f32[2,16,16,8], index: 8, kind: output, shape index: {}]  }
   0x1   :  { %4248 = sst [smem:[#allocation3_spill]] %s4244_s5  ;;  %s3345_s29 = smov 0  }
   0x2   :  { %s3347_s30 = smov 0   ;;  %s3349_s9 = smov 0  }
   0x3 LB: > { %s27_s10 = sadd.s32 1, %s3281_s29  ;;  %s30_s11 = sadd.s32 1, %s3285_s30  ;;  %s3289_s9 = sphi %s3349_s9, %s18_s9   ;;  %s3285_s30 = sphi %s3347_s30, %s4259_s30   ;;  %s3281_s29 = sphi %s3345_s29, %s4258_s29   ;;  %s3277_s28 = sphi %s3343_s28, %s4257_s28   ;;  %s3273_s27 = sphi %s3341_s27, %s4256_s27  }
   0x4   : > { %p28_p0 = scmp.ge.s32.totalorder %s27_s10, 2  ;;  %p2902_p1 = scmp.ge.s32.totalorder %s3289_s9, 1 }
   0x5   : > { %p348_p2 = scmp.lt.s32.totalorder %s3289_s9, 5 }
   0x6   : > { %s4261_s10 = smov (%p28_p0, %s27_s10), 0  ;;  %s4263_s11 = smov (!%p28_p0, %s30_s11), %s3285_s30 }
   0x7   : > { %p349_p3 = pnand %p2902_p1, %p348_p2  ;;  %p32_p4 = scmp.ge.s32.totalorder %s4263_s11, 2 }
   0x8   : > { %s4249_s5 = sld [smem:[#allocation3_spill]] (!%p349_p3)  ;;  %s3377_s14 = sshll.u32 (!%p349_p3), %s3273_s27, 3 }
   0x9   : > { %s4265_s11 = smov (%p32_p4, %s4263_s11), 0  ;;  %352 = sbr.rel (%p349_p3) target bundleno = 741 (0x2e5), region = 52 }
   0xa   : > { %p422_p5 = scmp.lt.s32.totalorder (!%p349_p3), %s3277_s28, 1  ;;  %s2904_s15 = sadd.s32 (!%p349_p3), 4294967295, %s3377_s14 }
   0xb   : > { %p438_p6 = scmp.lt.s32.totalorder (!%p349_p3), %s3377_s14, 15  ;;  %p420_p7 = scmp.gt.s32.totalorder (!%p349_p3), %s2904_s15, 0 }
   0xc   : > { %p2905_p8 = scmp.lt.s32.totalorder (!%p349_p3), %s2904_s15, 15  ;;  %p2938_p10 = scmp.ne.s32.totalorder (!%p349_p3), %s3273_s27, 0 }
   0xe   : > { %v573_v0 = vld [vmem:[%s4249_s5] sm:$0x3]  ;;  %vm609_vm0 = vcmask 1041408   ;;  %s4267_s28 = smov (!%p422_p5, %s3277_s28), 1  ;;  %s4269_s15 = smov (!%p420_p7, %s2904_s15), 0  ;;  %vm578_vm1 = vcmask 31744  }
   0xf   : > { %v611_v1 = vsel %vm609_vm0, %v573_v0, 0  ;;  %s3381_s16 = sshll.u32 %s4267_s28, 5  ;;  %s4271_s15 = smov (!%p2905_p8, %s4269_s15), 15  ;;  %v3388_v2 = vld [vmem:[%s4242_s3] ss:$0 sm:$0xff]  ;;  %vm852_vm2 = vcmask 1040384  }
  0x10   : > { %620 = vmatpush.bf16.msra.mxu0 %v611_v1  ;;  %s439_s17 = scalar_select %p438_p6, %s3377_s14, 15  ;;  %v3397_v3 = vld [vmem:[%s4243_s4] ss:$0 sm:$0xff]  ;;  %vm853_vm3 = vsmask.f32 256  ;;  %vm988_vm5 = vcmask 253952  }
  0x11   : > { %s2910_s18 = sshll.u32 %s4271_s15, 1  ;;  %s3149_s5 = sadd.s32 8, %s3377_s14  ;;  %vm3494_vm4 = vmand %vm852_vm2, %vm853_vm3  ;;  %vm985_vm6 = vcmask 257024  }
  0x12   : > { %s428_s19 = sadd.s32 %s3381_s16, %s2910_s18  ;;  %s2914_s20 = sshll.u32 %s439_s17, 1 }
  0x13   : > { %s2912_s23 = sshll.u32 %s428_s19, 3  ;;  %s442_s24 = sadd.s32 %s2914_s20, %s3381_s16 }
  0x14   : > { %s430_s12 = scalar_lea.vmem %s4239_s0, %s2912_s23  ;;  %s2916_s28 = sshll.u32 %s442_s24, 3 }
  0x15   : > { %s3402_s18 = scalar_lea.vmem %s4247_s8, %s2916_s28  ;;  %v475_v4 = vld [vmem:[%s430_s12] sm:$0xff]  ;;  %v476_v5 = vld [vmem:[%s430_s12 + $0x8] sm:$0xff]  ;;  %s3409_s21 = scalar_lea.vmem %s4240_s1, %s2916_s28 }
  0x16   : > { %v499_v6 = vmul.f32 %v3388_v2, %v475_v4  ;;  %v500_v7 = vmul.f32 %v3388_v2, %v476_v5  ;;  %v477_v12 = vld [vmem:[%s3409_s21] sm:$0xff]  ;;  %v478_v13 = vld [vmem:[%s3409_s21 + $0x8] sm:$0xff]  ;;  %p448_p9 = scmp.lt.s32.totalorder %s3149_s5, 15  ;;  %v479_v22 = vld [vmem:[%s3409_s21 + $0x10] sm:$0xff] }
  0x17   : > { %v501_v15 = vmul.f32 %v3388_v2, %v477_v12  ;;  %v502_v16 = vmul.f32 %v3388_v2, %v478_v13  ;;  %v480_v23 = vld [vmem:[%s3409_s21 + $0x18] sm:$0xff]  ;;  %v503_v24 = vmul.f32 %v3388_v2, %v479_v22  ;;  %v481_v31 = vld [vmem:[%s3409_s21 + $0x20] sm:$0xff]  ;;  %v482_v32 = vld [vmem:[%s3409_s21 + $0x28] sm:$0xff] }
  0x18   : > { %v523_v8 = vadd.f32 %v3397_v3, %v499_v6  ;;  %v524_v9 = vadd.f32 %v3397_v3, %v500_v7  ;;  %s4273_s5 = smov (!%p448_p9, %s3149_s5), 15  ;;  %v504_v25 = vmul.f32 %v3388_v2, %v480_v23  ;;  %v505_v33 = vmul.f32 %v3388_v2, %v481_v31  ;;  %v483_v40 = vld [vmem:[%s3409_s21 + $0x30] sm:$0xff]  ;;  %v484_v41 = vld [vmem:[%s3409_s21 + $0x38] sm:$0xff]  ;;  %v485_v49 = vld [vmem:[%s3409_s21 + $0x40] sm:$0xff] }
  0x19   : > { %s4275_s5 = smov (!%p448_p9, %s4273_s5), 15  ;;  %v525_v17 = vadd.f32 %v3397_v3, %v501_v15  ;;  %v526_v18 = vadd.f32 %v3397_v3, %v502_v16  ;;  %v527_v26 = vadd.f32 %v3397_v3, %v503_v24  ;;  %v506_v34 = vmul.f32 %v3388_v2, %v482_v32  ;;  %v486_v50 = vld [vmem:[%s3409_s21 + $0x48] sm:$0xff]  ;;  %v487_v58 = vld [vmem:[%s3409_s21 + $0x50] sm:$0xff]  ;;  %v488_v59 = vld [vmem:[%s3409_s21 + $0x58] sm:$0xff] }
  0x1a   : > { %v543_v10 = vmax.f32 %v523_v8, 0.0  ;;  %v544_v11 = vmax.f32 %v524_v9, 0.0  ;;  %s3421_s22 = sshll.u32 %s4275_s5, 1  ;;  %v528_v27 = vadd.f32 %v3397_v3, %v504_v25  ;;  %v529_v35 = vadd.f32 %v3397_v3, %v505_v33  ;;  %v489_v5 = vld [vmem:[%s3409_s21 + $0x60] sm:$0xff]  ;;  %v490_v6 = vld [vmem:[%s3409_s21 + $0x68] sm:$0xff]  ;;  %v492_v15 = vld [vmem:[%s3409_s21 + $0x78] sm:$0xff] }
  0x1b   : > { %s456_s14 = sadd.s32 %s3421_s22, %s3381_s16  ;;  %v545_v19 = vmax.f32 %v525_v17, 0.0  ;;  %v546_v20 = vmax.f32 %v526_v18, 0.0  ;;  %v547_v28 = vmax.f32 %v527_v26, 0.0  ;;  %v530_v36 = vadd.f32 %v3397_v3, %v506_v34  ;;  %v3483_v22 = vld [vmem:[%s4245_s6] ss:$0 sm:$0xff] }
  0x1c   : > { %v563_v14 = vpack.c.bf16 %v544_v11, %v543_v10  ;;  %v548_v29 = vmax.f32 %v528_v27, 0.0  ;;  %v549_v37 = vmax.f32 %v529_v35, 0.0  ;;  %v507_v42 = vmul.f32 %v3388_v2, %v483_v40  ;;  %s2923_s23 = sshll.u32 %s456_s14, 3 }
  0x1d   : > { %v564_v21 = vpack.c.bf16 %v546_v20, %v545_v19  ;;  %v550_v38 = vmax.f32 %v530_v36, 0.0  ;;  %v508_v43 = vmul.f32 %v3388_v2, %v484_v41  ;;  %v509_v51 = vmul.f32 %v3388_v2, %v485_v49  ;;  %s458_s26 = scalar_lea.vmem %s4241_s2, %s2923_s23 }
  0x1e   : > { %2928 = vmatmul.msk.bf16.vlgmr.msra.gmra.mxu0 %vm578_vm1, %v563_v14  ;;  %v565_v30 = vpack.c.bf16 %v548_v29, %v547_v28  ;;  %v531_v44 = vadd.f32 %v3397_v3, %v507_v42  ;;  %v510_v52 = vmul.f32 %v3388_v2, %v486_v50  ;;  %v511_v60 = vmul.f32 %v3388_v2, %v487_v58  ;;  %v491_v14 = vld [vmem:[%s3409_s21 + $0x70] sm:$0xff]  ;;  %v493_v25 = vld [vmem:[%s458_s26] sm:$0xff]  ;;  %v494_v26 = vld [vmem:[%s458_s26 + $0x8] sm:$0xff] }
  0x1f   : > { %v566_v39 = vpack.c.bf16 %v550_v38, %v549_v37  ;;  %v532_v45 = vadd.f32 %v3397_v3, %v508_v43  ;;  %v533_v53 = vadd.f32 %v3397_v3, %v509_v51  ;;  %v512_v61 = vmul.f32 %v3388_v2, %v488_v59 }
  0x20   : > { %v551_v46 = vmax.f32 %v531_v44, 0.0  ;;  %v534_v54 = vadd.f32 %v3397_v3, %v510_v52  ;;  %v535_v62 = vadd.f32 %v3397_v3, %v511_v60  ;;  %v513_v7 = vmul.f32 %v3388_v2, %v489_v5 }
  0x21   : > { %v552_v47 = vmax.f32 %v532_v45, 0.0  ;;  %v553_v55 = vmax.f32 %v533_v53, 0.0  ;;  %v536_v63 = vadd.f32 %v3397_v3, %v512_v61  ;;  %v514_v8 = vmul.f32 %v3388_v2, %v490_v6 }
  0x22   : > { %v554_v56 = vmax.f32 %v534_v54, 0.0  ;;  %v555_v0 = vmax.f32 %v535_v62, 0.0  ;;  %v537_v9 = vadd.f32 %v3397_v3, %v513_v7  ;;  %v515_v16 = vmul.f32 %v3388_v2, %v491_v14 }
  0x23   : > { %v567_v48 = vpack.c.bf16 %v552_v47, %v551_v46  ;;  %v556_v1 = vmax.f32 %v536_v63, 0.0  ;;  %v538_v10 = vadd.f32 %v3397_v3, %v514_v8  ;;  %v516_v17 = vmul.f32 %v3388_v2, %v492_v15 }
  0x24   : > { %v568_v57 = vpack.c.bf16 %v554_v56, %v553_v55  ;;  %v557_v11 = vmax.f32 %v537_v9, 0.0  ;;  %v539_v18 = vadd.f32 %v3397_v3, %v515_v16  ;;  %v517_v28 = vmul.f32 %v3388_v2, %v493_v25 }
  0x25   : > { %v569_v4 = vpack.c.bf16 %v556_v1, %v555_v0  ;;  %v558_v12 = vmax.f32 %v538_v10, 0.0  ;;  %v540_v19 = vadd.f32 %v3397_v3, %v516_v17  ;;  %v518_v29 = vmul.f32 %v3388_v2, %v494_v26 }
  0x26   : > { %v559_v20 = vmax.f32 %v539_v18, 0.0  ;;  %v541_v31 = vadd.f32 %v3397_v3, %v517_v28 }
  0x27   : > { %v570_v13 = vpack.c.bf16 %v558_v12, %v557_v11  ;;  %v542_v32 = vadd.f32 %v3397_v3, %v518_v29 }
  0x28   : > { %v561_v37 = vmax.f32 %v541_v31, 0.0 }
  0x29   : > { %v562_v38 = vmax.f32 %v542_v32, 0.0 }
  0x2b   : > { %v572_v42 = vpack.c.bf16 %v562_v38, %v561_v37 }
  0x2e   : > { %2929 = vmatmul.msk.bf16.gmra.mxu0 %vm578_vm1, %v564_v21  ;;  %v560_v21 = vmax.f32 %v540_v19, 0.0 }
  0x30   : > { %v571_v23 = vpack.c.bf16 %v560_v21, %v559_v20 }
  0x3e   : > { %2930 = vmatmul.msk.bf16.gmra.mxu0 %vm578_vm1, %v565_v30 }
  0x4e   : > { %2931 = vmatmul.msk.bf16.gmra.mxu0 %vm578_vm1, %v566_v39 }
  0x5e   : > { %2932 = vmatmul.msk.bf16.gmra.mxu0 %vm578_vm1, %v567_v48 }
  0x6e   : > { %2933 = vmatmul.msk.bf16.gmra.mxu0 %vm578_vm1, %v568_v57 }
  0x7e   : > { %2934 = vmatmul.msk.bf16.gmra.mxu0 %vm578_vm1, %v569_v4 }
  0x8e   : > { %2935 = vmatmul.msk.bf16.gmra.mxu0 %vm578_vm1, %v570_v13 }
  0x9b   : > { %v622_v24 = vpop.f32.mrf.mxu0 }
  0x9c   : > { %v623_v27 = vadd.f32 %v3483_v22, %v622_v24 }
  0x9e   : > { %2936 = vmatmul.msk.bf16.gmra.mxu0 %vm578_vm1, %v571_v23  ;;  %v672_v30 = vmax.f32 %v623_v27, 0.0 }
  0xa0   : > { %v692_v35 = vpack.c.bf16 %v672_v30, %v672_v30 }
  0xa2   : > { %v732_v40 = vunpack.c.l.b16 %v692_v35 }
  0xa3   : > { %v624_v33 = vpop.f32.mrf.mxu0 }
  0xa4   : > { %v625_v34 = vadd.f32 %v3483_v22, %v624_v33 }
  0xa6   : > { %v673_v36 = vmax.f32 %v625_v34, 0.0 }
  0xa8   : > { %v693_v39 = vpack.c.bf16 %v673_v36, %v673_v36 }
  0xaa   : > { %v733_v41 = vunpack.c.l.b16 %v693_v39 }
  0xab   : > { %v627_v43 = vpop.f32.mrf.mxu0 }
  0xac   : > { %v752_v44 = vpack.c.b16 %v733_v41, %v732_v40  ;;  %v628_v45 = vadd.f32 %v3483_v22, %v627_v43 }
  0xae   : > { %v763_v2 = vshrl.u32 %v752_v44, 16  ;;  %2937 = vmatmul.msk.bf16.gmra.mxu0 %vm578_vm1, %v572_v42  ;;  %v766_v47 = vshll.u32 %v752_v44, 16  ;;  %v674_v50 = vmax.f32 %v628_v45, 0.0 }
  0xb0   : > { %v765_v46 = vrot.slane %v763_v2, 7  ;;  %v694_v58 = vpack.c.bf16 %v674_v50, %v674_v50 }
  0xb2   : > { %v768_v48 = vor.u32 %v766_v47, %v765_v46  ;;  %v865_v49 = vsel %vm3494_vm4, %v765_v46, 0  ;;  %v734_v63 = vunpack.c.l.b16 %v694_v58 }
  0xb3   : > { %v897_v51 = vunpack.c.l.b16 %v865_v49  ;;  %v629_v52 = vpop.f32.mrf.mxu0 }
  0xb4   : > { %v855_v53 = vsel %vm3494_vm4, 0, %v768_v48  ;;  %v630_v54 = vadd.f32 %v3483_v22, %v629_v52 }
  0xb5   : > { %v895_v55 = vunpack.c.l.b16 %v855_v53  ;;  %v896_v56 = vunpack.c.h.b16 %v855_v53  ;;  %v927_v57 = vpack.c.b16 %v897_v51, %v897_v51 }
  0xb6   : > { %v675_v59 = vmax.f32 %v630_v54, 0.0 }
  0xb7   : > { %v925_v60 = vpack.c.b16 %v895_v55, %v895_v55  ;;  %v926_v61 = vpack.c.b16 %v896_v56, %v896_v56  ;;  %989 = vst.msk [vmem:[#allocation2 + $0x8] sm:$0x1] %vm988_vm5, %v927_v57 }
  0xb8   : > { %v695_v62 = vpack.c.bf16 %v675_v59, %v675_v59 }
  0xb9   : > { %986 = vst.msk [vmem:[#allocation2] sm:$0xf] %vm985_vm6, %v925_v60 }
  0xba   : > { %987 = vst.msk [vmem:[#allocation2 + $0x4] sm:$0xf] %vm985_vm6, %v926_v61  ;;  %v735_v0 = vunpack.c.l.b16 %v695_v62 }
  0xbb   : > { %v632_v1 = vpop.f32.mrf.mxu0 }
  0xbc   : > { %v753_v4 = vpack.c.b16 %v735_v0, %v734_v63  ;;  %v633_v6 = vadd.f32 %v3483_v22, %v632_v1 }
  0xbe   : > { %v770_v5 = vshrl.u32 %v753_v4, 16  ;;  %v773_v8 = vshll.u32 %v753_v4, 16  ;;  %v676_v11 = vmax.f32 %v633_v6, 0.0 }
  0xc0   : > { %v772_v7 = vrot.slane %v770_v5, 7  ;;  %v696_v19 = vpack.c.bf16 %v676_v11, %v676_v11 }
  0xc2   : > { %v775_v9 = vor.u32 %v773_v8, %v772_v7  ;;  %v866_v10 = vsel %vm3494_vm4, %v772_v7, 0  ;;  %v736_v25 = vunpack.c.l.b16 %v696_v19 }
  0xc3   : > { %v900_v12 = vunpack.c.l.b16 %v866_v10  ;;  %v634_v13 = vpop.f32.mrf.mxu0 }
  0xc4   : > { %v856_v14 = vsel %vm3494_vm4, 0, %v775_v9  ;;  %v635_v15 = vadd.f32 %v3483_v22, %v634_v13 }
  0xc5   : > { %v898_v16 = vunpack.c.l.b16 %v856_v14  ;;  %v899_v17 = vunpack.c.h.b16 %v856_v14  ;;  %v930_v18 = vpack.c.b16 %v900_v12, %v900_v12 }
  0xc6   : > { %v677_v20 = vmax.f32 %v635_v15, 0.0 }
  0xc7   : > { %v928_v21 = vpack.c.b16 %v898_v16, %v898_v16  ;;  %v929_v23 = vpack.c.b16 %v899_v17, %v899_v17  ;;  %992 = vst.msk [vmem:[#allocation2 + $0x14] sm:$0x1] %vm988_vm5, %v930_v18 }
  0xc8   : > { %v697_v24 = vpack.c.bf16 %v677_v20, %v677_v20 }
  0xc9   : > { %990 = vst.msk [vmem:[#allocation2 + $0xc] sm:$0xf] %vm985_vm6, %v928_v21 }
  0xca   : > { %991 = vst.msk [vmem:[#allocation2 + $0x10] sm:$0xf] %vm985_vm6, %v929_v23  ;;  %v737_v26 = vunpack.c.l.b16 %v697_v24 }
  0xcb   : > { %v637_v27 = vpop.f32.mrf.mxu0 }
  0xcc   : > { %v754_v28 = vpack.c.b16 %v737_v26, %v736_v25  ;;  %v638_v30 = vadd.f32 %v3483_v22, %v637_v27 }
  0xce   : > { %v777_v29 = vshrl.u32 %v754_v28, 16  ;;  %v780_v32 = vshll.u32 %v754_v28, 16  ;;  %v678_v35 = vmax.f32 %v638_v30, 0.0 }
  0xd0   : > { %v779_v31 = vrot.slane %v777_v29, 7  ;;  %v698_v43 = vpack.c.bf16 %v678_v35, %v678_v35 }
  0xd2   : > { %v782_v33 = vor.u32 %v780_v32, %v779_v31  ;;  %v867_v34 = vsel %vm3494_vm4, %v779_v31, 0  ;;  %v738_v47 = vunpack.c.l.b16 %v698_v43 }
  0xd3   : > { %v903_v36 = vunpack.c.l.b16 %v867_v34  ;;  %v639_v37 = vpop.f32.mrf.mxu0 }
  0xd4   : > { %v857_v38 = vsel %vm3494_vm4, 0, %v782_v33  ;;  %v640_v39 = vadd.f32 %v3483_v22, %v639_v37 }
  0xd5   : > { %v901_v40 = vunpack.c.l.b16 %v857_v38  ;;  %v902_v41 = vunpack.c.h.b16 %v857_v38  ;;  %v933_v42 = vpack.c.b16 %v903_v36, %v903_v36 }
  0xd6   : > { %v679_v44 = vmax.f32 %v640_v39, 0.0 }
  0xd7   : > { %v931_v2 = vpack.c.b16 %v901_v40, %v901_v40  ;;  %v932_v45 = vpack.c.b16 %v902_v41, %v902_v41  ;;  %995 = vst.msk [vmem:[#allocation2 + $0x20] sm:$0x1] %vm988_vm5, %v933_v42 }
  0xd8   : > { %v699_v46 = vpack.c.bf16 %v679_v44, %v679_v44 }
  0xd9   : > { %993 = vst.msk [vmem:[#allocation2 + $0x18] sm:$0xf] %vm985_vm6, %v931_v2 }
  0xda   : > { %994 = vst.msk [vmem:[#allocation2 + $0x1c] sm:$0xf] %vm985_vm6, %v932_v45  ;;  %v739_v48 = vunpack.c.l.b16 %v699_v46 }
  0xdb   : > { %v642_v49 = vpop.f32.mrf.mxu0 }
  0xdc   : > { %v755_v50 = vpack.c.b16 %v739_v48, %v738_v47  ;;  %v643_v52 = vadd.f32 %v3483_v22, %v642_v49 }
  0xde   : > { %v784_v51 = vshrl.u32 %v755_v50, 16  ;;  %v787_v54 = vshll.u32 %v755_v50, 16  ;;  %v680_v57 = vmax.f32 %v643_v52, 0.0 }
  0xe0   : > { %v786_v53 = vrot.slane %v784_v51, 7  ;;  %v700_v1 = vpack.c.bf16 %v680_v57, %v680_v57 }
  0xe2   : > { %v789_v55 = vor.u32 %v787_v54, %v786_v53  ;;  %v868_v56 = vsel %vm3494_vm4, %v786_v53, 0  ;;  %v740_v8 = vunpack.c.l.b16 %v700_v1 }
  0xe3   : > { %v906_v58 = vunpack.c.l.b16 %v868_v56  ;;  %v644_v59 = vpop.f32.mrf.mxu0 }
  0xe4   : > { %v858_v60 = vsel %vm3494_vm4, 0, %v789_v55  ;;  %v645_v61 = vadd.f32 %v3483_v22, %v644_v59 }
  0xe5   : > { %v904_v62 = vunpack.c.l.b16 %v858_v60  ;;  %v905_v63 = vunpack.c.h.b16 %v858_v60  ;;  %v936_v0 = vpack.c.b16 %v906_v58, %v906_v58 }
  0xe6   : > { %v681_v4 = vmax.f32 %v645_v61, 0.0 }
  0xe7   : > { %v934_v5 = vpack.c.b16 %v904_v62, %v904_v62  ;;  %v935_v6 = vpack.c.b16 %v905_v63, %v905_v63  ;;  %998 = vst.msk [vmem:[#allocation2 + $0x2c] sm:$0x1] %vm988_vm5, %v936_v0 }
  0xe8   : > { %v701_v7 = vpack.c.bf16 %v681_v4, %v681_v4 }
  0xe9   : > { %996 = vst.msk [vmem:[#allocation2 + $0x24] sm:$0xf] %vm985_vm6, %v934_v5 }
  0xea   : > { %997 = vst.msk [vmem:[#allocation2 + $0x28] sm:$0xf] %vm985_vm6, %v935_v6  ;;  %v741_v9 = vunpack.c.l.b16 %v701_v7 }
  0xeb   : > { %v647_v10 = vpop.f32.mrf.mxu0 }
  0xec   : > { %v756_v11 = vpack.c.b16 %v741_v9, %v740_v8  ;;  %v648_v13 = vadd.f32 %v3483_v22, %v647_v10 }
  0xee   : > { %v791_v12 = vshrl.u32 %v756_v11, 16  ;;  %v794_v15 = vshll.u32 %v756_v11, 16  ;;  %v682_v18 = vmax.f32 %v648_v13, 0.0 }
  0xf0   : > { %v793_v14 = vrot.slane %v791_v12, 7  ;;  %v702_v27 = vpack.c.bf16 %v682_v18, %v682_v18 }
  0xf2   : > { %v796_v16 = vor.u32 %v794_v15, %v793_v14  ;;  %v869_v17 = vsel %vm3494_vm4, %v793_v14, 0  ;;  %v742_v32 = vunpack.c.l.b16 %v702_v27 }
  0xf3   : > { %v909_v19 = vunpack.c.l.b16 %v869_v17  ;;  %v649_v20 = vpop.f32.mrf.mxu0 }
  0xf4   : > { %v859_v21 = vsel %vm3494_vm4, 0, %v796_v16  ;;  %v650_v23 = vadd.f32 %v3483_v22, %v649_v20 }
  0xf5   : > { %v907_v24 = vunpack.c.l.b16 %v859_v21  ;;  %v908_v25 = vunpack.c.h.b16 %v859_v21  ;;  %v939_v26 = vpack.c.b16 %v909_v19, %v909_v19 }
  0xf6   : > { %v683_v28 = vmax.f32 %v650_v23, 0.0 }
  0xf7   : > { %v937_v29 = vpack.c.b16 %v907_v24, %v907_v24  ;;  %v938_v30 = vpack.c.b16 %v908_v25, %v908_v25  ;;  %1001 = vst.msk [vmem:[#allocation2 + $0x38] sm:$0x1] %vm988_vm5, %v939_v26 }
  0xf8   : > { %v703_v31 = vpack.c.bf16 %v683_v28, %v683_v28 }
  0xf9   : > { %999 = vst.msk [vmem:[#allocation2 + $0x30] sm:$0xf] %vm985_vm6, %v937_v29 }
  0xfa   : > { %1000 = vst.msk [vmem:[#allocation2 + $0x34] sm:$0xf] %vm985_vm6, %v938_v30  ;;  %v743_v33 = vunpack.c.l.b16 %v703_v31 }
  0xfb   : > { %v652_v34 = vpop.f32.mrf.mxu0 }
  0xfc   : > { %v757_v35 = vpack.c.b16 %v743_v33, %v742_v32  ;;  %v653_v37 = vadd.f32 %v3483_v22, %v652_v34 }
  0xfe   : > { %v798_v36 = vshrl.u32 %v757_v35, 16  ;;  %v801_v39 = vshll.u32 %v757_v35, 16  ;;  %v684_v42 = vmax.f32 %v653_v37, 0.0 }
 0x100   : > { %v800_v38 = vrot.slane %v798_v36, 7  ;;  %v704_v49 = vpack.c.bf16 %v684_v42, %v684_v42 }
 0x102   : > { %v803_v40 = vor.u32 %v801_v39, %v800_v38  ;;  %v870_v41 = vsel %vm3494_vm4, %v800_v38, 0  ;;  %v744_v54 = vunpack.c.l.b16 %v704_v49 }
 0x103   : > { %v912_v43 = vunpack.c.l.b16 %v870_v41  ;;  %v654_v44 = vpop.f32.mrf.mxu0 }
 0x104   : > { %v860_v2 = vsel %vm3494_vm4, 0, %v803_v40  ;;  %v655_v45 = vadd.f32 %v3483_v22, %v654_v44 }
 0x105   : > { %v910_v46 = vunpack.c.l.b16 %v860_v2  ;;  %v911_v47 = vunpack.c.h.b16 %v860_v2  ;;  %v942_v48 = vpack.c.b16 %v912_v43, %v912_v43 }
 0x106   : > { %v685_v50 = vmax.f32 %v655_v45, 0.0 }
 0x107   : > { %v940_v51 = vpack.c.b16 %v910_v46, %v910_v46  ;;  %v941_v52 = vpack.c.b16 %v911_v47, %v911_v47  ;;  %1004 = vst.msk [vmem:[#allocation2 + $0x44] sm:$0x1] %vm988_vm5, %v942_v48 }
 0x108   : > { %v705_v53 = vpack.c.bf16 %v685_v50, %v685_v50 }
 0x109   : > { %1002 = vst.msk [vmem:[#allocation2 + $0x3c] sm:$0xf] %vm985_vm6, %v940_v51 }
 0x10a   : > { %1003 = vst.msk [vmem:[#allocation2 + $0x40] sm:$0xf] %vm985_vm6, %v941_v52  ;;  %v745_v55 = vunpack.c.l.b16 %v705_v53 }
 0x10b   : > { %v657_v56 = vpop.f32.mrf.mxu0 }
 0x10c   : > { %v758_v57 = vpack.c.b16 %v745_v55, %v744_v54  ;;  %v658_v59 = vadd.f32 %v3483_v22, %v657_v56 }
 0x10e   : > { %v805_v58 = vshrl.u32 %v758_v57, 16  ;;  %v808_v61 = vshll.u32 %v758_v57, 16  ;;  %v686_v0 = vmax.f32 %v658_v59, 0.0 }
 0x110   : > { %v807_v60 = vrot.slane %v805_v58, 7  ;;  %v706_v10 = vpack.c.bf16 %v686_v0, %v686_v0 }
 0x112   : > { %v810_v62 = vor.u32 %v808_v61, %v807_v60  ;;  %v871_v63 = vsel %vm3494_vm4, %v807_v60, 0  ;;  %v746_v15 = vunpack.c.l.b16 %v706_v10 }
 0x113   : > { %v915_v1 = vunpack.c.l.b16 %v871_v63  ;;  %v659_v4 = vpop.f32.mrf.mxu0 }
 0x114   : > { %v861_v5 = vsel %vm3494_vm4, 0, %v810_v62  ;;  %v660_v6 = vadd.f32 %v3483_v22, %v659_v4 }
 0x115   : > { %v913_v7 = vunpack.c.l.b16 %v861_v5  ;;  %v914_v8 = vunpack.c.h.b16 %v861_v5  ;;  %v945_v9 = vpack.c.b16 %v915_v1, %v915_v1 }
 0x116   : > { %v687_v11 = vmax.f32 %v660_v6, 0.0 }
 0x117   : > { %v943_v12 = vpack.c.b16 %v913_v7, %v913_v7  ;;  %v944_v13 = vpack.c.b16 %v914_v8, %v914_v8  ;;  %1007 = vst.msk [vmem:[#allocation2 + $0x50] sm:$0x1] %vm988_vm5, %v945_v9 }
 0x118   : > { %v707_v14 = vpack.c.bf16 %v687_v11, %v687_v11 }
 0x119   : > { %1005 = vst.msk [vmem:[#allocation2 + $0x48] sm:$0xf] %vm985_vm6, %v943_v12 }
 0x11a   : > { %1006 = vst.msk [vmem:[#allocation2 + $0x4c] sm:$0xf] %vm985_vm6, %v944_v13  ;;  %v747_v16 = vunpack.c.l.b16 %v707_v14 }
 0x11b   : > { %v662_v17 = vpop.f32.mrf.mxu0 }
 0x11c   : > { %v759_v18 = vpack.c.b16 %v747_v16, %v746_v15  ;;  %v663_v20 = vadd.f32 %v3483_v22, %v662_v17 }
 0x11e   : > { %v812_v19 = vshrl.u32 %v759_v18, 16  ;;  %v815_v23 = vshll.u32 %v759_v18, 16  ;;  %v688_v26 = vmax.f32 %v663_v20, 0.0 }
 0x120   : > { %v814_v21 = vrot.slane %v812_v19, 7  ;;  %v708_v34 = vpack.c.bf16 %v688_v26, %v688_v26 }
 0x122   : > { %v817_v24 = vor.u32 %v815_v23, %v814_v21  ;;  %v872_v25 = vsel %vm3494_vm4, %v814_v21, 0  ;;  %v748_v39 = vunpack.c.l.b16 %v708_v34 }
 0x123   : > { %v918_v27 = vunpack.c.l.b16 %v872_v25  ;;  %v664_v28 = vpop.f32.mrf.mxu0 }
 0x124   : > { %v862_v29 = vsel %vm3494_vm4, 0, %v817_v24  ;;  %v665_v30 = vadd.f32 %v3483_v22, %v664_v28 }
 0x125   : > { %v916_v31 = vunpack.c.l.b16 %v862_v29  ;;  %v917_v32 = vunpack.c.h.b16 %v862_v29  ;;  %v948_v33 = vpack.c.b16 %v918_v27, %v918_v27 }
 0x126   : > { %v689_v35 = vmax.f32 %v665_v30, 0.0 }
 0x127   : > { %v946_v36 = vpack.c.b16 %v916_v31, %v916_v31  ;;  %v947_v37 = vpack.c.b16 %v917_v32, %v917_v32  ;;  %1010 = vst.msk [vmem:[#allocation2 + $0x5c] sm:$0x1] %vm988_vm5, %v948_v33 }
 0x128   : > { %v709_v38 = vpack.c.bf16 %v689_v35, %v689_v35 }
 0x129   : > { %1008 = vst.msk [vmem:[#allocation2 + $0x54] sm:$0xf] %vm985_vm6, %v946_v36 }
 0x12a   : > { %1009 = vst.msk [vmem:[#allocation2 + $0x58] sm:$0xf] %vm985_vm6, %v947_v37  ;;  %v749_v40 = vunpack.c.l.b16 %v709_v38 }
 0x12b   : > { %v667_v41 = vpop.f32.mrf.mxu0 }
 0x12c   : > { %v760_v42 = vpack.c.b16 %v749_v40, %v748_v39  ;;  %v668_v44 = vadd.f32 %v3483_v22, %v667_v41 }
 0x12e   : > { %v819_v43 = vshrl.u32 %v760_v42, 16  ;;  %v822_v45 = vshll.u32 %v760_v42, 16  ;;  %v690_v48 = vmax.f32 %v668_v44, 0.0 }
 0x130   : > { %v821_v2 = vrot.slane %v819_v43, 7  ;;  %v710_v56 = vpack.c.bf16 %v690_v48, %v690_v48 }
 0x132   : > { %v824_v46 = vor.u32 %v822_v45, %v821_v2  ;;  %v873_v47 = vsel %vm3494_vm4, %v821_v2, 0  ;;  %v750_v61 = vunpack.c.l.b16 %v710_v56 }
 0x133   : > { %v921_v49 = vunpack.c.l.b16 %v873_v47  ;;  %v669_v50 = vpop.f32.mrf.mxu0 }
 0x134   : > { %v863_v51 = vsel %vm3494_vm4, 0, %v824_v46  ;;  %v670_v52 = vadd.f32 %v3483_v22, %v669_v50 }
 0x135   : > { %v919_v53 = vunpack.c.l.b16 %v863_v51  ;;  %v920_v54 = vunpack.c.h.b16 %v863_v51  ;;  %v951_v55 = vpack.c.b16 %v921_v49, %v921_v49 }
 0x136   : > { %v691_v57 = vmax.f32 %v670_v52, 0.0 }
 0x137   : > { %v949_v58 = vpack.c.b16 %v919_v53, %v919_v53  ;;  %v950_v59 = vpack.c.b16 %v920_v54, %v920_v54  ;;  %1013 = vst.msk [vmem:[#allocation2 + $0x68] sm:$0x1] %vm988_vm5, %v951_v55 }
 0x138   : > { %v711_v60 = vpack.c.bf16 %v691_v57, %v691_v57 }
 0x139   : > { %1011 = vst.msk [vmem:[#allocation2 + $0x60] sm:$0xf] %vm985_vm6, %v949_v58 }
 0x13a   : > { %1012 = vst.msk [vmem:[#allocation2 + $0x64] sm:$0xf] %vm985_vm6, %v950_v59  ;;  %v751_v62 = vunpack.c.l.b16 %v711_v60 }
 0x13c   : > { %v761_v63 = vpack.c.b16 %v751_v62, %v750_v61 }
 0x13e   : > { %v826_v0 = vshrl.u32 %v761_v63, 16  ;;  %v829_v22 = vshll.u32 %v761_v63, 16 }
 0x140   : > { %v828_v1 = vrot.slane %v826_v0, 7 }
 0x142   : > { %v831_v4 = vor.u32 %v829_v22, %v828_v1  ;;  %v874_v5 = vsel %vm3494_vm4, %v828_v1, 0 }
 0x143   : > { %v924_v6 = vunpack.c.l.b16 %v874_v5 }
 0x144   : > { %v864_v7 = vsel %vm3494_vm4, 0, %v831_v4 }
 0x145   : > { %v922_v8 = vunpack.c.l.b16 %v864_v7  ;;  %v923_v9 = vunpack.c.h.b16 %v864_v7  ;;  %v954_v10 = vpack.c.b16 %v924_v6, %v924_v6 }
 0x146   : > { %1020 = sbr.rel (%p2938_p10) target bundleno = 335 (0x14f), region = 56 }
 0x147   : > { %v952_v11 = vpack.c.b16 %v922_v8, %v922_v8  ;;  %v953_v12 = vpack.c.b16 %v923_v9, %v923_v9  ;;  %1016 = vst.msk [vmem:[#allocation2 + $0x74] sm:$0x1] %vm988_vm5, %v954_v10 }
 0x149   : > { %1014 = vst.msk [vmem:[#allocation2 + $0x6c] sm:$0xf] %vm985_vm6, %v952_v11 }
 0x14a   : > { %1015 = vst.msk [vmem:[#allocation2 + $0x70] sm:$0xf] %vm985_vm6, %v953_v12 }
 0x14b   : > { %v3291_v13 = vmov 0  }
 0x14c   : > { %1021 = vst.msk [vmem:[#allocation2] sm:$0xf] %vm985_vm6, %v3291_v13 }
 0x14d   : > { %1022 = vst.msk [vmem:[#allocation2 + $0x4] sm:$0xf] %vm985_vm6, %v3291_v13 }
 0x14e   : > { %1023 = vst.msk [vmem:[#allocation2 + $0x8] sm:$0x1] %vm988_vm5, %v3291_v13 }
 0x14f PF: > { %p2939_p11 = scmp.ne.s32.totalorder %s3273_s27, 1 }
 0x151   : > { %1027 = sbr.rel (%p2939_p11) target bundleno = 346 (0x15a), region = 60 }
 0x156   : > { %v3292_v3 = vmov 0  }
 0x157   : > { %1029 = vst.msk [vmem:[#allocation2 + $0x6c] sm:$0xf] %vm985_vm6, %v3292_v3 }
 0x158   : > { %1030 = vst.msk [vmem:[#allocation2 + $0x70] sm:$0xf] %vm985_vm6, %v3292_v3 }
 0x159   : > { %1031 = vst.msk [vmem:[#allocation2 + $0x74] sm:$0x1] %vm988_vm5, %v3292_v3 }
 0x15a PF: > { %vm1283_vm7 = vcmask 1042432   ;;  %vm1284_vm8 = vcmask 1046532   ;;  %v3593_v14 = vld [vmem:[#allocation2 + $0x10] sm:$0xf]  ;;  %v3595_v15 = vld [vmem:[#allocation2 + $0x14] sm:$0x1] }
 0x15b   : > { %vm3597_vm9 = vmor %vm1283_vm7, %vm1284_vm8  ;;  %v1559_v17 = vld [vmem:[#allocation2 + $0xc] sm:$0xe]  ;;  %v1593_v18 = vrot.slane %v3593_v14, 5  ;;  %v1596_v20 = vrot.slane %v3595_v15, 5  ;;  %vm1056_vm10 = vsmask.f32 3328 }
 0x15c   : > { %v2948_v19 = vrot.slane %v1559_v17, 9  ;;  %vm1057_vm11 = vsmask.f32 7440  ;;  %v1648_v24 = vld [vmem:[#allocation2 + $0x18] sm:$0xf]  ;;  %s3293_s27 = smov 32  }
 0x15d   : > { %v1595_v21 = vrot.slane %v1593_v18, 4  ;;  %v1649_v25 = vld [vmem:[#allocation2 + $0x1c] sm:$0xf]  ;;  %v1664_v28 = vld [vmem:[#allocation2 + $0x20] sm:$0x1]  ;;  %v1673_v29 = vshrl.u32 %v1648_v24, 16  ;;  %vm3617_vm12 = vmor %vm1056_vm10, %vm1057_vm11 }
 0x15e   : > { %v1594_v23 = vsel %vm3597_vm9, %v2948_v19, %v1593_v18  ;;  %v1676_v30 = vshll.u32 %v1648_v24, 16  ;;  %v1032_v31 = vld [vmem:[#allocation2] sm:$0xf]  ;;  %v1682_v33 = vshll.u32 %v1649_v25, 16  ;;  %v1686_v34 = vshrl.u32 %v1649_v25, 16  ;;  %v3166_v7 = vld [vmem:[#allocation2 + $0x18] sm:$0xff] }
 0x15f   : > { %v1597_v26 = vsel %vm3597_vm9, %v1595_v21, %v1596_v20  ;;  %v2136_v27 = vunpack.c.l.b16 %v1594_v23  ;;  %v1692_v35 = vshll.u32 %v1664_v28, 16  ;;  %v3607_v36 = vld [vmem:[#allocation2 + $0x4] sm:$0xf]  ;;  %v1675_v37 = vrot.slane %v1673_v29, 4  ;;  %v3609_v39 = vld [vmem:[#allocation2 + $0x8] sm:$0x1] }
 0x160   : > { %v2137_v32 = vunpack.c.l.b16 %v1597_v26  ;;  %v1678_v38 = vrot.slane %v1676_v30, 5  ;;  %v1060_v40 = vshrl.u32 %v1032_v31, 16  ;;  %v1063_v41 = vshll.u32 %v1032_v31, 16  ;;  %v3612_v49 = vld [vmem:[#allocation2 + $0x1c] sm:$0xf]  ;;  %s3294_s16 = smov 64  }
 0x161   : > { %v1684_v43 = vrot.slane %v1682_v33, 5  ;;  %v1688_v44 = vrot.slane %v1686_v34, 4  ;;  %v1694_v2 = vrot.slane %v1692_v35, 5  ;;  %v1069_v48 = vshll.u32 %v3607_v36, 16  ;;  %v3623_v54 = vld [vmem:[#allocation2 + $0x20] sm:$0x1] }
 0x162   : > { %v2152_v42 = vpack.c.b16 %v2137_v32, %v2136_v27  ;;  %v1679_v45 = vor.u32 %v1678_v38, %v1675_v37  ;;  %v1062_v46 = vrot.slane %v1060_v40, 4  ;;  %v1065_v47 = vrot.slane %v1063_v41, 5  ;;  %v1560_v55 = vld [vmem:[#allocation2 + $0x18] sm:$0xe]  ;;  %v1034_v59 = vld [vmem:[#allocation2 + $0xc] sm:$0xf] }
 0x163   : > { %v1689_v51 = vor.u32 %v1688_v44, %v1684_v43  ;;  %v1073_v52 = vshrl.u32 %v3607_v36, 16  ;;  %v1079_v53 = vshll.u32 %v3609_v39, 16  ;;  %v1071_v58 = vrot.slane %v1069_v48, 5  ;;  %v3631_v9 = vld [vmem:[#allocation2 + $0x10] sm:$0xf]  ;;  %s3295_s13 = smov 96  }
 0x164   : > { %2160 = vrot.lane.b32.xlu0 %v2152_v42, %s3293_s27  ;;  %v1680_v56 = vrot.slane %v1679_v45, 4  ;;  %v1066_v57 = vor.u32 %v1065_v47, %v1062_v46  ;;  %v2949_v63 = vrot.slane %v1560_v55, 9  ;;  %v1600_v22 = vrot.slane %v3612_v49, 5  ;;  %v3635_v3 = vld [vmem:[#allocation2 + $0x14] sm:$0x1] }
 0x165   : > { %v1690_v60 = vrot.slane %v1689_v51, 4  ;;  %v1075_v61 = vrot.slane %v1073_v52, 4  ;;  %v1081_v62 = vrot.slane %v1079_v53, 5  ;;  %v1603_v4 = vrot.slane %v3623_v54, 5  ;;  %v1251_v30 = vld [vmem:[#allocation2] sm:$0xe] }
 0x166   : > { %v1685_v0 = vsel %vm3617_vm12, %v1680_v56, %v1684_v43  ;;  %v1067_v1 = vrot.slane %v1066_v57, 4  ;;  %v1084_v10 = vshrl.u32 %v1034_v59, 16  ;;  %v1601_v12 = vsel %vm3597_vm9, %v2949_v63, %v1600_v22  ;;  %v1252_v38 = vld [vmem:[#allocation2 + $0xc] sm:$0xe]  ;;  %v1348_v48 = vld [vmem:[#allocation2 + $0x28] sm:$0xf] }
 0x167   : > { %v1695_v5 = vsel %vm3617_vm12, %v1690_v60, %v1694_v2  ;;  %v2224_v6 = vunpack.c.l.b16 %v1685_v0  ;;  %v1076_v8 = vor.u32 %v1075_v61, %v1071_v58  ;;  %v1602_v13 = vrot.slane %v1600_v22, 4  ;;  %v1561_v51 = vld [vmem:[#allocation2 + $0x24] sm:$0xe]  ;;  %v1361_v57 = vld [vmem:[#allocation2 + $0x2c] sm:$0x1] }
 0x168   : > { %v2225_v11 = vunpack.c.l.b16 %v1695_v5  ;;  %v1072_v17 = vsel %vm3617_vm12, %v1067_v1, %v1071_v58  ;;  %v2138_v19 = vunpack.c.l.b16 %v1601_v12  ;;  %v1086_v20 = vrot.slane %v1084_v10, 4  ;;  %v1036_v61 = vld [vmem:[#allocation2 + $0x18] sm:$0xf] }
 0x169   : > { %v1077_v18 = vrot.slane %v1076_v8, 4  ;;  %v1604_v23 = vsel %vm3597_vm9, %v1602_v13, %v1603_v4  ;;  %v1087_v24 = vshll.u32 %v1034_v59, 16  ;;  %v1093_v25 = vshll.u32 %v3631_v9, 16 }
 0x16a   : > { %v2240_v21 = vpack.c.b16 %v2225_v11, %v2224_v6  ;;  %v2139_v27 = vunpack.c.l.b16 %v1604_v23  ;;  %v1097_v28 = vshrl.u32 %v3631_v9, 16  ;;  %v1103_v29 = vshll.u32 %v3635_v3, 16  ;;  %v1650_v23 = vld [vmem:[#allocation2 + $0x24] sm:$0xf] }
 0x16b   : > { %v1082_v26 = vsel %vm3617_vm12, %v1077_v18, %v1081_v62  ;;  %v1984_v31 = vunpack.c.l.b16 %v1072_v17  ;;  %v1089_v33 = vrot.slane %v1087_v24, 5  ;;  %v1095_v34 = vrot.slane %v1093_v25, 5  ;;  %v1037_v62 = vld [vmem:[#allocation2 + $0x1c] sm:$0xf]  ;;  %v1253_v17 = vld [vmem:[#allocation2 + $0x18] sm:$0xe] }
 0x16c   : > { %2208 = vrot.lane.b32.xlu0 %v3166_v7, %s3294_s16  ;;  %2248 = vrot.lane.b32.xlu1 %v2240_v21, %s3295_s13  ;;  %v1985_v32 = vunpack.c.l.b16 %v1082_v26  ;;  %v1099_v35 = vrot.slane %v1097_v28, 4  ;;  %v1295_v40 = vrot.slane %v3631_v9, 5  ;;  %v2940_v41 = vrot.slane %v1251_v30, 9  ;;  %v3662_v7 = vld [vmem:[#allocation2 + $0x20] sm:$0x1]  ;;  %v3167_v24 = vld [vmem:[#allocation2 + $0x24] sm:$0xff] }
 0x16d   : > { %v1090_v37 = vor.u32 %v1089_v33, %v1086_v20  ;;  %v2153_v42 = vpack.c.b16 %v2139_v27, %v2138_v19  ;;  %v1105_v44 = vrot.slane %v1103_v29, 5  ;;  %v1288_v2 = vrot.slane %v3607_v36, 5 }
 0x16e   : > { %v1100_v43 = vor.u32 %v1099_v35, %v1095_v34  ;;  %v2000_v45 = vpack.c.b16 %v1985_v32, %v1984_v31  ;;  %v1291_v47 = vrot.slane %v3609_v39, 5  ;;  %v2941_v53 = vrot.slane %v1252_v38, 9  ;;  %v3674_v35 = vld [vmem:[#allocation2 + $0x28] sm:$0xf] }
 0x16f   : > { %v1091_v46 = vrot.slane %v1090_v37, 4  ;;  %v1289_v55 = vsel %vm3597_vm9, %v2940_v41, %v1288_v2  ;;  %v1290_v56 = vrot.slane %v1288_v2, 4  ;;  %v1297_v59 = vrot.slane %v1295_v40, 4 }
 0x170   : > { %v1101_v52 = vrot.slane %v1100_v43, 4  ;;  %v1298_v60 = vrot.slane %v3635_v3, 5  ;;  %v2024_v36 = vunpack.c.l.b16 %v1289_v55  ;;  %v2950_v1 = vrot.slane %v1561_v51, 9 }
 0x171   : > { %v1096_v58 = vsel %vm3617_vm12, %v1091_v46, %v1095_v34  ;;  %v1292_v0 = vsel %vm3597_vm9, %v1290_v56, %v1291_v47  ;;  %v1607_v5 = vrot.slane %v1348_v48, 5  ;;  %v1610_v6 = vrot.slane %v1361_v57, 5  ;;  %v3679_v46 = vld [vmem:[#allocation2 + $0x2c] sm:$0x1]  ;;  %v1350_v56 = vld [vmem:[#allocation2 + $0x34] sm:$0xf] }
 0x172   : > { %v1106_v39 = vsel %vm3617_vm12, %v1101_v52, %v1105_v44  ;;  %v1986_v63 = vunpack.c.l.b16 %v1096_v58  ;;  %v2025_v4 = vunpack.c.l.b16 %v1292_v0  ;;  %v1108_v8 = vshrl.u32 %v1036_v61, 16  ;;  %v3158_v44 = vld [vmem:[#allocation2 + $0xc] sm:$0xff]  ;;  %v1038_v0 = vld [vmem:[#allocation2 + $0x24] sm:$0xf] }
 0x173   : > { %v1987_v22 = vunpack.c.l.b16 %v1106_v39  ;;  %v1111_v9 = vshll.u32 %v1036_v61, 16  ;;  %v1117_v10 = vshll.u32 %v1037_v62, 16  ;;  %v1296_v11 = vsel %vm3597_vm9, %v2941_v53, %v1295_v40 }
 0x174   : > { %2162 = vrot.lane.b32.xlu0 %v2153_v42, %s3293_s27  ;;  %2008 = vrot.lane.b32.xlu1 %v2000_v45, %s3293_s27  ;;  %v1299_v12 = vsel %vm3597_vm9, %v1297_v59, %v1298_v60  ;;  %v2040_v13 = vpack.c.b16 %v2025_v4, %v2024_v36  ;;  %v1609_v3 = vrot.slane %v1607_v5, 4  ;;  %v1608_v19 = vsel %vm3597_vm9, %v2950_v1, %v1607_v5  ;;  %v1362_v60 = vld [vmem:[#allocation2 + $0x38] sm:$0x1]  ;;  %v1562_v36 = vld [vmem:[#allocation2 + $0x30] sm:$0xe] }
 0x175   : > { %v2001_v18 = vpack.c.b16 %v1987_v22, %v1986_v63  ;;  %v1110_v20 = vrot.slane %v1108_v8, 4  ;;  %v1113_v21 = vrot.slane %v1111_v9, 5  ;;  %v1119_v26 = vrot.slane %v1117_v10, 5  ;;  %v3696_v10 = vld [vmem:[#allocation2 + $0x28] sm:$0xf] }
 0x176   : > { %2048 = vrot.lane.b32.xlu2 %v2040_v13, %s3294_s16  ;;  %v1611_v25 = vsel %vm3597_vm9, %v1609_v3, %v1610_v6  ;;  %v1121_v27 = vshrl.u32 %v1037_v62, 16  ;;  %v1127_v28 = vshll.u32 %v3662_v7, 16  ;;  %v2026_v29 = vunpack.c.l.b16 %v1296_v11 }
 0x177   : > { %v1114_v30 = vor.u32 %v1113_v21, %v1110_v20  ;;  %v2942_v31 = vrot.slane %v1253_v17, 9  ;;  %v1302_v32 = vrot.slane %v1037_v62, 5  ;;  %v2027_v33 = vunpack.c.l.b16 %v1299_v12  ;;  %v1051_v20 = vld [vmem:[#allocation2 + $0x2c] sm:$0x1] }
 0x178   : > { %v1123_v34 = vrot.slane %v1121_v27, 4  ;;  %v1697_v37 = vshrl.u32 %v1650_v23, 16  ;;  %v1700_v38 = vshll.u32 %v1650_v23, 16  ;;  %v2140_v40 = vunpack.c.l.b16 %v1608_v19 }
 0x179   : > { %v2141_v41 = vunpack.c.l.b16 %v1611_v25  ;;  %v1129_v42 = vrot.slane %v1127_v28, 5  ;;  %v1305_v43 = vrot.slane %v3662_v7, 5  ;;  %v1115_v2 = vrot.slane %v1114_v30, 4 }
 0x17a   : > { %v1124_v45 = vor.u32 %v1123_v34, %v1119_v26  ;;  %v1699_v47 = vrot.slane %v1697_v37, 4  ;;  %v1702_v48 = vrot.slane %v1700_v38, 5  ;;  %v3683_v51 = vsel %vm3597_vm9, %v2942_v31, %v1302_v32  ;;  %v1254_v37 = vld [vmem:[#allocation2 + $0x24] sm:$0xe]  ;;  %v1652_v38 = vld [vmem:[#allocation2 + $0x30] sm:$0xf] }
 0x17b   : > { %v1304_v52 = vrot.slane %v1302_v32, 4  ;;  %v1706_v53 = vshll.u32 %v3674_v35, 16  ;;  %v1710_v55 = vshrl.u32 %v3674_v35, 16  ;;  %v2041_v57 = vpack.c.b16 %v2027_v33, %v2026_v29 }
 0x17c   : > { %2010 = vrot.lane.b32.xlu0 %v2001_v18, %s3293_s27  ;;  %2210 = vrot.lane.b32.xlu1 %v3167_v24, %s3294_s16  ;;  %v1125_v58 = vrot.slane %v1124_v45, 4  ;;  %v1703_v59 = vor.u32 %v1702_v48, %v1699_v47  ;;  %v2154_v61 = vpack.c.b16 %v2141_v41, %v2140_v40  ;;  %v1716_v63 = vshll.u32 %v3679_v46, 16 }
 0x17d   : > { %v1708_v62 = vrot.slane %v1706_v53, 5  ;;  %v1712_v39 = vrot.slane %v1710_v55, 4  ;;  %v1120_v1 = vsel %vm3617_vm12, %v1115_v2, %v1119_v26  ;;  %v2028_v4 = vunpack.c.l.b16 %v3683_v51  ;;  %v3168_v2 = vld [vmem:[#allocation2 + $0x30] sm:$0xff] }
 0x17e   : > { %2096 = vrot.lane.b32.xlu2 %v3158_v44, %s3295_s13  ;;  %v1130_v22 = vsel %vm3617_vm12, %v1125_v58, %v1129_v42  ;;  %v1704_v5 = vrot.slane %v1703_v59, 4  ;;  %v1306_v6 = vsel %vm3597_vm9, %v1304_v52, %v1305_v43  ;;  %v1718_v8 = vrot.slane %v1716_v63, 5  ;;  %v3710_v44 = vld [vmem:[#allocation2 + $0x34] sm:$0xf]  ;;  %v3714_v59 = vld [vmem:[#allocation2 + $0x38] sm:$0x1] }
 0x17f   : > { %v1713_v7 = vor.u32 %v1712_v39, %v1708_v62  ;;  %v2951_v9 = vrot.slane %v1562_v36, 9  ;;  %v1614_v12 = vrot.slane %v1350_v56, 5  ;;  %v1617_v13 = vrot.slane %v1362_v60, 5 }
 0x180   : > { %v1709_v11 = vsel %vm3617_vm12, %v1704_v5, %v1708_v62  ;;  %v1132_v3 = vshrl.u32 %v1038_v0, 16  ;;  %v1988_v17 = vunpack.c.l.b16 %v1120_v1  ;;  %v1989_v18 = vunpack.c.l.b16 %v1130_v22  ;;  %v1352_v1 = vld [vmem:[#allocation2 + $0x40] sm:$0xf]  ;;  %v1563_v22 = vld [vmem:[#allocation2 + $0x3c] sm:$0xe] }
 0x181   : > { %v1714_v19 = vrot.slane %v1713_v7, 4  ;;  %v1135_v21 = vshll.u32 %v1038_v0, 16  ;;  %v2226_v23 = vunpack.c.l.b16 %v1709_v11  ;;  %v1616_v24 = vrot.slane %v1614_v12, 4  ;;  %v3159_v11 = vld [vmem:[#allocation2 + $0x18] sm:$0xff] }
 0x182   : > { %v1134_v25 = vrot.slane %v1132_v3, 4  ;;  %v1141_v26 = vshll.u32 %v3696_v10, 16  ;;  %v1615_v28 = vsel %vm3597_vm9, %v2951_v9, %v1614_v12  ;;  %v1145_v30 = vshrl.u32 %v3696_v10, 16  ;;  %v1363_v9 = vld [vmem:[#allocation2 + $0x44] sm:$0x1] }
 0x183   : > { %v1719_v27 = vsel %vm3617_vm12, %v1714_v19, %v1718_v8  ;;  %v1137_v29 = vrot.slane %v1135_v21, 5  ;;  %v1618_v32 = vsel %vm3597_vm9, %v1616_v24, %v1617_v13  ;;  %v1151_v34 = vshll.u32 %v1051_v20, 16 }
 0x184   : > { %2164 = vrot.lane.b32.xlu0 %v2154_v61, %s3293_s27  ;;  %2050 = vrot.lane.b32.xlu1 %v2041_v57, %s3294_s16  ;;  %v2227_v31 = vunpack.c.l.b16 %v1719_v27  ;;  %v1143_v33 = vrot.slane %v1141_v26, 5  ;;  %v2002_v40 = vpack.c.b16 %v1989_v18, %v1988_v17  ;;  %v2029_v41 = vunpack.c.l.b16 %v1306_v6  ;;  %v1040_v17 = vld [vmem:[#allocation2 + $0x30] sm:$0xf]  ;;  %v3725_v18 = vld [vmem:[#allocation2 + $0x34] sm:$0xf] }
 0x185   : > { %v1138_v42 = vor.u32 %v1137_v29, %v1134_v25  ;;  %v1147_v43 = vrot.slane %v1145_v30, 4  ;;  %v2142_v47 = vunpack.c.l.b16 %v1615_v28  ;;  %v2143_v48 = vunpack.c.l.b16 %v1618_v32 }
 0x186   : > { %v2241_v45 = vpack.c.b16 %v2227_v31, %v2226_v23  ;;  %v1309_v51 = vrot.slane %v3696_v10, 5  ;;  %v2943_v55 = vrot.slane %v1254_v37, 9  ;;  %v1721_v56 = vshrl.u32 %v1652_v38, 16 }
 0x187   : > { %v1139_v52 = vrot.slane %v1138_v42, 4  ;;  %v1148_v53 = vor.u32 %v1147_v43, %v1143_v33  ;;  %v1153_v57 = vrot.slane %v1151_v34, 5  ;;  %v1312_v58 = vrot.slane %v1051_v20, 5  ;;  %v3735_v34 = vld [vmem:[#allocation2 + $0x38] sm:$0x1] }
 0x188   : > { %2250 = vrot.lane.b32.xlu2 %v2241_v45, %s3295_s13  ;;  %v1724_v60 = vshll.u32 %v1652_v38, 16  ;;  %v1730_v36 = vshll.u32 %v3710_v44, 16  ;;  %v1311_v39 = vrot.slane %v1309_v51, 4  ;;  %v1723_v63 = vrot.slane %v1721_v56, 4 }
 0x189   : > { %v1144_v61 = vsel %vm3617_vm12, %v1139_v52, %v1143_v33  ;;  %v1149_v62 = vrot.slane %v1148_v53, 4  ;;  %v2042_v5 = vpack.c.b16 %v2029_v41, %v2028_v4  ;;  %v1734_v7 = vshrl.u32 %v3710_v44, 16 }
 0x18a   : > { %v1726_v0 = vrot.slane %v1724_v60, 5  ;;  %v1732_v6 = vrot.slane %v1730_v36, 5  ;;  %v1740_v8 = vshll.u32 %v3714_v59, 16  ;;  %v2155_v10 = vpack.c.b16 %v2143_v48, %v2142_v47  ;;  %v1654_v48 = vld [vmem:[#allocation2 + $0x3c] sm:$0xf] }
 0x18b   : > { %v1990_v12 = vunpack.c.l.b16 %v1144_v61  ;;  %v1310_v13 = vsel %vm3597_vm9, %v2943_v55, %v1309_v51  ;;  %v1154_v19 = vsel %vm3617_vm12, %v1149_v62, %v1153_v57  ;;  %v1313_v4 = vsel %vm3597_vm9, %v1311_v39, %v1312_v58  ;;  %v1255_v55 = vld [vmem:[#allocation2 + $0x30] sm:$0xe]  ;;  %v3747_v39 = vld [vmem:[#allocation2 + $0x40] sm:$0xf] }
 0x18c   : > { %2012 = vrot.lane.b32.xlu0 %v2002_v40, %s3293_s27  ;;  %2212 = vrot.lane.b32.xlu1 %v3168_v2, %s3294_s16  ;;  %v1727_v3 = vor.u32 %v1726_v0, %v1723_v63  ;;  %v1736_v20 = vrot.slane %v1734_v7, 4  ;;  %v2952_v21 = vrot.slane %v1563_v22, 9  ;;  %v1742_v24 = vrot.slane %v1740_v8, 5  ;;  %v3169_v0 = vld [vmem:[#allocation2 + $0x3c] sm:$0xff] }
 0x18d   : > { %v1621_v25 = vrot.slane %v1352_v1, 5  ;;  %v1624_v26 = vrot.slane %v1363_v9, 5  ;;  %v1156_v28 = vshrl.u32 %v1040_v17, 16  ;;  %v1159_v29 = vshll.u32 %v1040_v17, 16  ;;  %v3750_v9 = vld [vmem:[#allocation2 + $0x44] sm:$0x1] }
 0x18e   : > { %v1728_v23 = vrot.slane %v1727_v3, 4  ;;  %v1737_v27 = vor.u32 %v1736_v20, %v1732_v6  ;;  %v1165_v30 = vshll.u32 %v3725_v18, 16  ;;  %v1991_v31 = vunpack.c.l.b16 %v1154_v19  ;;  %v1354_v3 = vld [vmem:[#allocation2 + $0x4c] sm:$0xf]  ;;  %v1364_v20 = vld [vmem:[#allocation2 + $0x50] sm:$0x1] }
 0x18f   : > { %v1623_v33 = vrot.slane %v1621_v25, 4  ;;  %v1169_v37 = vshrl.u32 %v3725_v18, 16  ;;  %v1622_v41 = vsel %vm3597_vm9, %v2952_v21, %v1621_v25  ;;  %v1158_v42 = vrot.slane %v1156_v28, 4  ;;  %v1564_v21 = vld [vmem:[#allocation2 + $0x48] sm:$0xe] }
 0x190   : > { %2098 = vrot.lane.b32.xlu2 %v3159_v11, %s3295_s13  ;;  %v1733_v32 = vsel %vm3617_vm12, %v1728_v23, %v1732_v6  ;;  %v1738_v38 = vrot.slane %v1737_v27, 4  ;;  %v1161_v2 = vrot.slane %v1159_v29, 5  ;;  %v1167_v45 = vrot.slane %v1165_v30, 5  ;;  %v1042_v27 = vld [vmem:[#allocation2 + $0x3c] sm:$0xf] }
 0x191   : > { %v2228_v40 = vunpack.c.l.b16 %v1733_v32  ;;  %v1625_v43 = vsel %vm3597_vm9, %v1623_v33, %v1624_v26  ;;  %v1171_v47 = vrot.slane %v1169_v37, 4  ;;  %v2030_v51 = vunpack.c.l.b16 %v1310_v13  ;;  %v3767_v32 = vld [vmem:[#allocation2 + $0x40] sm:$0xf]  ;;  %v3160_v33 = vld [vmem:[#allocation2 + $0x24] sm:$0xff] }
 0x192   : > { %v1743_v52 = vsel %vm3617_vm12, %v1738_v38, %v1742_v24  ;;  %v1175_v53 = vshll.u32 %v3735_v34, 16  ;;  %v2031_v56 = vunpack.c.l.b16 %v1313_v4  ;;  %v1162_v58 = vor.u32 %v1161_v2, %v1158_v42 }
 0x193   : > { %v2229_v57 = vunpack.c.l.b16 %v1743_v52  ;;  %v1172_v60 = vor.u32 %v1171_v47, %v1167_v45  ;;  %v2003_v36 = vpack.c.b16 %v1991_v31, %v1990_v12  ;;  %v2144_v61 = vunpack.c.l.b16 %v1622_v41 }
 0x194   : > { %2166 = vrot.lane.b32.xlu0 %v2155_v10, %s3293_s27  ;;  %2052 = vrot.lane.b32.xlu1 %v2042_v5, %s3294_s16  ;;  %v2145_v62 = vunpack.c.l.b16 %v1625_v43  ;;  %v1745_v63 = vshrl.u32 %v1654_v48, 16  ;;  %v1163_v22 = vrot.slane %v1162_v58, 4  ;;  %v2944_v5 = vrot.slane %v1255_v55, 9 }
 0x195   : > { %v2242_v1 = vpack.c.b16 %v2229_v57, %v2228_v40  ;;  %v1316_v6 = vrot.slane %v3725_v18, 5  ;;  %v1173_v7 = vrot.slane %v1172_v60, 4  ;;  %v1177_v8 = vrot.slane %v1175_v53, 5 }
 0x196   : > { %v1747_v10 = vrot.slane %v1745_v63, 4  ;;  %v1748_v11 = vshll.u32 %v1654_v48, 16  ;;  %v1754_v12 = vshll.u32 %v3747_v39, 16  ;;  %v1758_v13 = vshrl.u32 %v3747_v39, 16 }
 0x197   : > { %v2043_v17 = vpack.c.b16 %v2031_v56, %v2030_v51  ;;  %v2156_v19 = vpack.c.b16 %v2145_v62, %v2144_v61  ;;  %v1168_v18 = vsel %vm3617_vm12, %v1163_v22, %v1167_v45  ;;  %v1319_v23 = vrot.slane %v3735_v34, 5  ;;  %v3775_v56 = vld [vmem:[#allocation2 + $0x44] sm:$0x1]  ;;  %v1656_v22 = vld [vmem:[#allocation2 + $0x48] sm:$0xf] }
 0x198   : > { %2252 = vrot.lane.b32.xlu2 %v2242_v1, %s3295_s13  ;;  %v1750_v4 = vrot.slane %v1748_v11, 5  ;;  %v1756_v24 = vrot.slane %v1754_v12, 5  ;;  %v1760_v25 = vrot.slane %v1758_v13, 4  ;;  %v1764_v26 = vshll.u32 %v3750_v9, 16  ;;  %v3181_v11 = vld [vmem:[%s4246_s7 + $0x38] sm:$0xff] }
 0x199   : > { %v1178_v28 = vsel %vm3617_vm12, %v1173_v7, %v1177_v8  ;;  %v3765_v29 = vsel %vm3597_vm9, %v2944_v5, %v1316_v6  ;;  %v1318_v30 = vrot.slane %v1316_v6, 4  ;;  %v3769_v37 = vunpack.c.l.b16 %v1168_v18  ;;  %v1256_v8 = vld [vmem:[#allocation2 + $0x3c] sm:$0xe]  ;;  %2587 = vmatpush.bf16.msra.mxu1 %v3181_v11 }
 0x19a   : > { %v1751_v31 = vor.u32 %v1750_v4, %v1747_v10  ;;  %v1761_v34 = vor.u32 %v1760_v25, %v1756_v24  ;;  %v1766_v38 = vrot.slane %v1764_v26, 5  ;;  %v2953_v40 = vrot.slane %v1564_v21, 9  ;;  %v3189_v10 = vld [vmem:[%s4246_s7 + $0x78] sm:$0xff] }
 0x19b   : > { %v1628_v42 = vrot.slane %v1354_v3, 5  ;;  %v1631_v43 = vrot.slane %v1364_v20, 5  ;;  %v1180_v2 = vshrl.u32 %v1042_v27, 16  ;;  %v1183_v47 = vshll.u32 %v1042_v27, 16  ;;  %2636 = vmatpush.bf16.msra.mxu2 %v3189_v10 }
 0x19c   : > { %2014 = vrot.lane.b32.xlu0 %v2003_v36, %s3293_s27  ;;  %2214 = vrot.lane.b32.xlu1 %v3169_v0, %s3294_s16  ;;  %v1752_v41 = vrot.slane %v1751_v31, 4  ;;  %v1762_v45 = vrot.slane %v1761_v34, 4  ;;  %v1189_v48 = vshll.u32 %v3767_v32, 16  ;;  %v1193_v51 = vshrl.u32 %v3767_v32, 16  ;;  %v3806_v31 = vld [vmem:[#allocation2 + $0x50] sm:$0x1] }
 0x19d   : > { %v1993_v52 = vunpack.c.l.b16 %v1178_v28  ;;  %v1630_v55 = vrot.slane %v1628_v42, 4  ;;  %v1182_v57 = vrot.slane %v1180_v2, 4  ;;  %v1320_v58 = vsel %vm3597_vm9, %v1318_v30, %v1319_v23  ;;  %v3188_v23 = vld [vmem:[%s4246_s7 + $0x70] sm:$0xff] }
 0x19e   : > { %v1757_v53 = vsel %vm3617_vm12, %v1752_v41, %v1756_v24  ;;  %v1767_v60 = vsel %vm3617_vm12, %v1762_v45, %v1766_v38  ;;  %v1185_v61 = vrot.slane %v1183_v47, 5  ;;  %v1629_v63 = vsel %vm3597_vm9, %v2953_v40, %v1628_v42  ;;  %v3170_v24 = vld [vmem:[#allocation2 + $0x48] sm:$0xff]  ;;  %v3818_v47 = vld [vmem:[#allocation2 + $0x58] sm:$0xf] }
 0x19f   : > { %v2230_v36 = vunpack.c.l.b16 %v1757_v53  ;;  %v2231_v62 = vunpack.c.l.b16 %v1767_v60  ;;  %v3785_v0 = vrot.slane %v1189_v48, 5  ;;  %v1195_v1 = vrot.slane %v1193_v51, 4  ;;  %2637 = vmatpush.bf16.msra.mxu2 %v3188_v23  ;;  %v3823_v53 = vld [vmem:[#allocation2 + $0x4c] sm:$0xf]  ;;  %v3835_v60 = vld [vmem:[#allocation2 + $0x5c] sm:$0x1] }
 0x1a0   : > { %2100 = vrot.lane.b32.xlu2 %v3160_v33, %s3295_s13  ;;  %v1632_v5 = vsel %vm3597_vm9, %v1630_v55, %v1631_v43  ;;  %v1186_v6 = vor.u32 %v1185_v61, %v1182_v57  ;;  %v1199_v7 = vshll.u32 %v3775_v56, 16  ;;  %v1381_v12 = vshrl.u32 %v3593_v14, 16  ;;  %v3180_v61 = vld [vmem:[%s4246_s7 + $0x30] sm:$0xff] }
 0x1a1   : > { %v2032_v13 = vunpack.c.l.b16 %v3765_v29  ;;  %v2033_v3 = vunpack.c.l.b16 %v1320_v58  ;;  %v2004_v18 = vpack.c.b16 %v1993_v52, %v3769_v37  ;;  %v2243_v4 = vpack.c.b16 %v2231_v62, %v2230_v36  ;;  %v1044_v52 = vld [vmem:[#allocation2 + $0x48] sm:$0xf]  ;;  %2588 = vmatpush.bf16.msra.mxu1 %v3180_v61  ;;  %v3859_v23 = vld [vmem:[#allocation2 + $0x50] sm:$0x1] }
 0x1a2   : > { %v2146_v20 = vunpack.c.l.b16 %v1629_v63  ;;  %v1769_v21 = vshrl.u32 %v1656_v22, 16  ;;  %v2147_v25 = vunpack.c.l.b16 %v1632_v5  ;;  %v1187_v26 = vrot.slane %v1186_v6, 4  ;;  %v3187_v36 = vld [vmem:[%s4246_s7 + $0x68] sm:$0xff]  ;;  %v3161_v5 = vld [vmem:[#allocation2 + $0x30] sm:$0xff] }
 0x1a3   : > { %v2945_v27 = vrot.slane %v1256_v8, 9  ;;  %v1772_v28 = vshll.u32 %v1656_v22, 16  ;;  %v1201_v30 = vrot.slane %v1199_v7, 5  ;;  %v1377_v34 = vshll.u32 %v3593_v14, 16  ;;  %2638 = vmatpush.bf16.msra.mxu2 %v3187_v36  ;;  %v3186_v7 = vld [vmem:[%s4246_s7 + $0x60] sm:$0xff] }
 0x1a4   : > { %2168 = vrot.lane.b32.xlu0 %v2156_v19, %s3293_s27  ;;  %2054 = vrot.lane.b32.xlu1 %v2043_v17, %s3294_s16  ;;  %v1196_v17 = vor.u32 %v1195_v1, %v3785_v0  ;;  %v3800_v19 = vld [vmem:[#allocation2 + $0x4c] sm:$0xf]  ;;  %v1771_v33 = vrot.slane %v1769_v21, 4  ;;  %v1387_v38 = vshll.u32 %v3595_v15, 16  ;;  %v1323_v40 = vrot.slane %v3767_v32, 5 }
 0x1a5   : > { %v1778_v37 = vshll.u32 %v3800_v19, 16  ;;  %v1774_v41 = vrot.slane %v1772_v28, 5  ;;  %v3812_v42 = vrot.slane %v1381_v12, 4  ;;  %v3814_v43 = vpack.c.b16 %v2033_v3, %v2032_v13  ;;  %v1565_v1 = vld [vmem:[#allocation2 + $0x54] sm:$0xe] }
 0x1a6   : > { %v1197_v29 = vrot.slane %v1196_v17, 4  ;;  %v1782_v45 = vshrl.u32 %v3800_v19, 16  ;;  %v2157_v48 = vpack.c.b16 %v2147_v25, %v2146_v20  ;;  %v1326_v15 = vrot.slane %v3775_v56, 5  ;;  %v3179_v17 = vld [vmem:[%s4246_s7 + $0x28] sm:$0xff]  ;;  %v3928_v14 = vld [vmem:[#allocation2 + $0x64] sm:$0xf] }
 0x1a7   : > { %v1780_v2 = vrot.slane %v1778_v37, 5  ;;  %v1775_v51 = vor.u32 %v1774_v41, %v1771_v33  ;;  %v1788_v32 = vshll.u32 %v3806_v31, 16  ;;  %v1192_v55 = vsel %vm3617_vm12, %v1187_v26, %v3785_v0  ;;  %2639 = vmatpush.bf16.msra.mxu2 %v3186_v7  ;;  %2589 = vmatpush.bf16.msra.mxu1 %v3179_v17  ;;  %v3184_v7 = vld [vmem:[%s4246_s7 + $0x50] sm:$0xff] }
 0x1a8   : > { %2254 = vrot.lane.b32.xlu2 %v2243_v4, %s3295_s13  ;;  %v1202_v57 = vsel %vm3617_vm12, %v1197_v29, %v1201_v30  ;;  %v3833_v58 = vsel %vm3597_vm9, %v2945_v27, %v1323_v40  ;;  %v1784_v56 = vrot.slane %v1782_v45, 4  ;;  %v1325_v62 = vrot.slane %v1323_v40, 4  ;;  %v1658_v29 = vld [vmem:[#allocation2 + $0x54] sm:$0xf] }
 0x1a9   : > { %v1776_v63 = vrot.slane %v1775_v51, 4  ;;  %v1790_v0 = vrot.slane %v1788_v32, 5  ;;  %v1635_v22 = vrot.slane %v3818_v47, 5  ;;  %v1204_v8 = vshrl.u32 %v1044_v52, 16  ;;  %v3875_v51 = vld [vmem:[#allocation2 + $0x58] sm:$0xf] }
 0x1aa   : > { %v1785_v6 = vor.u32 %v1784_v56, %v1780_v2  ;;  %v1207_v10 = vshll.u32 %v1044_v52, 16  ;;  %v1213_v11 = vshll.u32 %v3823_v53, 16  ;;  %v3848_v12 = vunpack.c.l.b16 %v1192_v55  ;;  %v3191_v56 = vld [vmem:[%s4246_s7 + $0x88] sm:$0xff] }
 0x1ab   : > { %v3850_v13 = vunpack.c.l.b16 %v1202_v57  ;;  %v1781_v3 = vsel %vm3617_vm12, %v1776_v63, %v1780_v2  ;;  %v2954_v20 = vrot.slane %v1565_v1, 9  ;;  %v1638_v21 = vrot.slane %v3835_v60, 5  ;;  %v3178_v57 = vld [vmem:[%s4246_s7 + $0x20] sm:$0xff]  ;;  %v3898_v63 = vld [vmem:[#allocation2 + $0x5c] sm:$0x1]  ;;  %2691 = vmatpush.bf16.msra.mxu3 %v3191_v56 }
 0x1ac   : > { %2016 = vrot.lane.b32.xlu0 %v2004_v18, %s3293_s27  ;;  %2216 = vrot.lane.b32.xlu1 %v3170_v24, %s3294_s16  ;;  %v1217_v18 = vshrl.u32 %v3823_v53, 16  ;;  %v1786_v4 = vrot.slane %v1785_v6, 4  ;;  %v1206_v24 = vrot.slane %v1204_v8, 4  ;;  %v1637_v25 = vrot.slane %v1635_v22, 4  ;;  %v1343_v8 = vld [vmem:[#allocation2 + $0xc] sm:$0xf] }
 0x1ad   : > { %v1209_v26 = vrot.slane %v1207_v10, 5  ;;  %v3861_v27 = vrot.slane %v1213_v11, 5  ;;  %v3863_v30 = vrot.slane %v1387_v38, 5  ;;  %v3868_v33 = vsel %vm3597_vm9, %v1325_v62, %v1326_v15  ;;  %v1257_v62 = vld [vmem:[#allocation2 + $0x48] sm:$0xe]  ;;  %2590 = vmatpush.bf16.msra.mxu1 %v3178_v57 }
 0x1ae   : > { %v1219_v28 = vrot.slane %v1217_v18, 4  ;;  %v1791_v37 = vsel %vm3617_vm12, %v1786_v4, %v1790_v0  ;;  %v2232_v40 = vunpack.c.l.b16 %v1781_v3  ;;  %v1223_v38 = vshll.u32 %v3859_v23, 16  ;;  %v3171_v3 = vld [vmem:[#allocation2 + $0x54] sm:$0xff]  ;;  %v3183_v57 = vld [vmem:[%s4246_s7 + $0x48] sm:$0xff] }
 0x1af   : > { %v2233_v41 = vunpack.c.l.b16 %v1791_v37  ;;  %v1210_v2 = vor.u32 %v1209_v26, %v1206_v24  ;;  %v1405_v32 = vshrl.u32 %v3612_v49, 16  ;;  %v1411_v15 = vshll.u32 %v3623_v54, 16  ;;  %v3164_v54 = vld [vmem:[#allocation2 + $0x54] sm:$0xff] }
 0x1b0   : > { %2102 = vrot.lane.b32.xlu2 %v3161_v5, %s3295_s13  ;;  %v1220_v45 = vor.u32 %v1219_v28, %v3861_v27  ;;  %v2034_v52 = vunpack.c.l.b16 %v3833_v58  ;;  %v1793_v55 = vshrl.u32 %v1658_v29, 16  ;;  %v2005_v36 = vpack.c.b16 %v3850_v13, %v3848_v12  ;;  %v3177_v13 = vld [vmem:[%s4246_s7 + $0x18] sm:$0xff] }
 0x1b1   : > { %v1636_v58 = vsel %vm3597_vm9, %v2954_v20, %v1635_v22  ;;  %v1639_v61 = vsel %vm3597_vm9, %v1637_v25, %v1638_v21  ;;  %v2244_v0 = vpack.c.b16 %v2233_v41, %v2232_v40  ;;  %v1211_v1 = vrot.slane %v1210_v2, 4  ;;  %v3190_v21 = vld [vmem:[%s4246_s7 + $0x80] sm:$0xff]  ;;  %2591 = vmatpush.bf16.msra.mxu1 %v3177_v13 }
 0x1b2   : > { %v1795_v5 = vrot.slane %v1793_v55, 4  ;;  %v1796_v6 = vshll.u32 %v1658_v29, 16  ;;  %v1221_v10 = vrot.slane %v1220_v45, 4  ;;  %v1225_v11 = vrot.slane %v1223_v38, 5  ;;  %2692 = vmatpush.bf16.msra.mxu3 %v3190_v21  ;;  %v3240_v21 = vld [vmem:[#allocation2 + $0x1c] sm:$0xf] }
 0x1b3   : > { %v1802_v22 = vshll.u32 %v3875_v51, 16  ;;  %v1806_v12 = vshrl.u32 %v3875_v51, 16  ;;  %v2148_v17 = vunpack.c.l.b16 %v1636_v58  ;;  %v2149_v18 = vunpack.c.l.b16 %v1639_v61 }
 0x1b4   : > { %2170 = vrot.lane.b32.xlu0 %v2157_v48, %s3293_s27  ;;  %2056 = vrot.lane.b32.xlu1 %v3814_v43, %s3294_s16  ;;  %v3185_v48 = vld [vmem:[%s4246_s7 + $0x58] sm:$0xff]  ;;  %v2035_v43 = vunpack.c.l.b16 %v3868_v33  ;;  %v2946_v4 = vrot.slane %v1257_v62, 9  ;;  %v1798_v20 = vrot.slane %v1796_v6, 5  ;;  %v1330_v24 = vrot.slane %v3823_v53, 5 }
 0x1b5   : > { %2640 = vmatpush.bf16.msra.mxu2 %v3185_v48  ;;  %v1804_v25 = vrot.slane %v1802_v22, 5  ;;  %v1808_v26 = vrot.slane %v1806_v12, 4  ;;  %v1812_v28 = vshll.u32 %v3898_v63, 16  ;;  %v1216_v29 = vsel %vm3617_vm12, %v1211_v1, %v3861_v27 }
 0x1b6   : > { %v1799_v33 = vor.u32 %v1798_v20, %v1795_v5  ;;  %v1368_v37 = vshrl.u32 %v1343_v8, 16  ;;  %v1371_v40 = vshll.u32 %v1343_v8, 16  ;;  %v1226_v41 = vsel %vm3617_vm12, %v1221_v10, %v1225_v11  ;;  %v1566_v10 = vld [vmem:[#allocation2 + $0x60] sm:$0xe]  ;;  %v3175_v11 = vld [vmem:[%s4246_s7 + $0x8] sm:$0xff] }
 0x1b7   : > { %v1809_v53 = vor.u32 %v1808_v26, %v1804_v25  ;;  %v1814_v2 = vrot.slane %v1812_v28, 5  ;;  %v1379_v45 = vrot.slane %v1377_v34, 5  ;;  %v2045_v38 = vpack.c.b16 %v2035_v43, %v2034_v52  ;;  %v3176_v34 = vld [vmem:[%s4246_s7 + $0x10] sm:$0xff]  ;;  %v3162_v52 = vld [vmem:[#allocation2 + $0x3c] sm:$0xff] }
 0x1b8   : > { %2256 = vrot.lane.b32.xlu2 %v2244_v0, %s3295_s13  ;;  %v1800_v48 = vrot.slane %v1799_v33, 4  ;;  %v1370_v27 = vrot.slane %v1368_v37, 4  ;;  %v1373_v55 = vrot.slane %v1371_v40, 5  ;;  %v1332_v56 = vrot.slane %v1330_v24, 4  ;;  %2592 = vmatpush.bf16.msra.mxu1 %v3176_v34  ;;  %v3968_v37 = vld [vmem:[#allocation2 + $0x58] sm:$0xf] }
 0x1b9   : > { %2641 = vmatpush.bf16.msra.mxu2 %v3184_v7  ;;  %v1810_v58 = vrot.slane %v1809_v53, 4  ;;  %v1384_v61 = vor.u32 %v3812_v42, %v1379_v45  ;;  %v3933_v43 = vunpack.c.l.b16 %v1216_v29  ;;  %v3935_v62 = vunpack.c.l.b16 %v1226_v41  ;;  %v3182_v42 = vld [vmem:[%s4246_s7 + $0x40] sm:$0xff] }
 0x1ba   : > { %v1805_v0 = vsel %vm3617_vm12, %v1800_v48, %v1804_v25  ;;  %v1374_v1 = vor.u32 %v1373_v55, %v1370_v27  ;;  %v2158_v5 = vpack.c.b16 %v2149_v18, %v2148_v17  ;;  %v3944_v6 = vsel %vm3597_vm9, %v2946_v4, %v1330_v24  ;;  %v1046_v25 = vld [vmem:[#allocation2 + $0x54] sm:$0xf]  ;;  %v3241_v27 = vld [vmem:[#allocation2 + $0x20] sm:$0x1] }
 0x1bb   : > { %v1815_v7 = vsel %vm3617_vm12, %v1810_v58, %v1814_v2  ;;  %v1385_v8 = vrot.slane %v1384_v61, 4  ;;  %v2234_v22 = vunpack.c.l.b16 %v1805_v0  ;;  %v1642_v17 = vrot.slane %v3928_v14, 5  ;;  %v3976_v2 = vld [vmem:[#allocation2 + $0x5c] sm:$0x1]  ;;  %v3174_v34 = vld [vmem:[%s4246_s7] sm:$0xff] }
 0x1bc   : > { %2018 = vrot.lane.b32.xlu0 %v2005_v36, %s3293_s27  ;;  %2218 = vrot.lane.b32.xlu1 %v3171_v3, %s3294_s16  ;;  %v1333_v36 = vrot.slane %v3859_v23, 5  ;;  %v1864_v23 = vld [vmem:[#allocation2 + $0x18] sm:$0xe]  ;;  %v2235_v12 = vunpack.c.l.b16 %v1815_v7  ;;  %v1375_v13 = vrot.slane %v1374_v1, 4  ;;  %v3951_v3 = vld [vmem:[#allocation2 + $0x68] sm:$0x1]  ;;  %v2006_v26 = vpack.c.b16 %v3935_v62, %v3933_v43 }
 0x1bd   : > { %2642 = vmatpush.bf16.msra.mxu2 %v3183_v57  ;;  %v1390_v4 = vsel %vm3617_vm12, %v1385_v8, %v3863_v30  ;;  %v2956_v20 = vrot.slane %v1864_v23, 9  ;;  %v1898_v24 = vrot.slane %v3240_v21, 5  ;;  %v2955_v33 = vrot.slane %v1566_v10, 9  ;;  %2593 = vmatpush.bf16.msra.mxu1 %v3175_v11  ;;  %v1660_v0 = vld [vmem:[#allocation2 + $0x60] sm:$0xf] }
 0x1be   : > { %v3956_v18 = vsel %vm3597_vm9, %v1332_v56, %v1333_v36  ;;  %v1380_v28 = vsel %vm3617_vm12, %v1375_v13, %v1379_v45  ;;  %v3966_v29 = vunpack.c.l.b16 %v1390_v4  ;;  %v1645_v40 = vrot.slane %v3951_v3, 5  ;;  %v3172_v7 = vld [vmem:[#allocation2 + $0x60] sm:$0xff] }
 0x1bf   : > { %v3971_v30 = vunpack.c.l.b16 %v1380_v28  ;;  %v1899_v41 = vsel %vm3597_vm9, %v2956_v20, %v1898_v24  ;;  %v1900_v53 = vrot.slane %v1898_v24, 4  ;;  %v2245_v45 = vpack.c.b16 %v2235_v12, %v2234_v22  ;;  %v3995_v12 = vld [vmem:[#allocation2 + $0x64] sm:$0xf]  ;;  %v3998_v28 = vld [vmem:[#allocation2 + $0x68] sm:$0x1] }
 0x1c0   : > { %2104 = vrot.lane.b32.xlu2 %v3162_v52, %s3295_s13  ;;  %v1644_v48 = vrot.slane %v1642_v17, 4  ;;  %v1901_v55 = vrot.slane %v3241_v27, 5  ;;  %v1228_v57 = vshrl.u32 %v1046_v25, 16  ;;  %v2264_v36 = vunpack.c.l.b16 %v1899_v41 }
 0x1c1   : > { %2643 = vmatpush.bf16.msra.mxu2 %v3182_v42  ;;  %v2128_v56 = vpack.c.b16 %v3966_v29, %v3971_v30  ;;  %v1231_v58 = vshll.u32 %v1046_v25, 16  ;;  %v1237_v61 = vshll.u32 %v3968_v37, 16  ;;  %v1241_v43 = vshrl.u32 %v3968_v37, 16  ;;  %2594 = vmatpush.bf16.msra.mxu1 %v3174_v34  ;;  %v1258_v25 = vld [vmem:[#allocation2 + $0x54] sm:$0xe] }
 0x1c2   : > { %v1902_v52 = vsel %vm3597_vm9, %v1900_v53, %v1901_v55  ;;  %v1247_v62 = vshll.u32 %v3976_v2, 16  ;;  %v1643_v1 = vsel %vm3597_vm9, %v2955_v33, %v1642_v17  ;;  %v2036_v8 = vunpack.c.l.b16 %v3944_v6  ;;  %v1345_v55 = vld [vmem:[#allocation2 + $0x18] sm:$0xf] }
 0x1c3   : > { %v2265_v23 = vunpack.c.l.b16 %v1902_v52  ;;  %v1233_v42 = vrot.slane %v1231_v58, 5  ;;  %v2037_v10 = vunpack.c.l.b16 %v3956_v18  ;;  %v1646_v11 = vsel %vm3597_vm9, %v1644_v48, %v1645_v40 }
 0x1c4   : > { %2172 = vrot.lane.b32.xlu0 %v2158_v5, %s3293_s27  ;;  %2058 = vrot.lane.b32.xlu1 %v2045_v38, %s3294_s16  ;;  %v1230_v38 = vrot.slane %v1228_v57, 4  ;;  %v1239_v5 = vrot.slane %v1237_v61, 5  ;;  %v1243_v22 = vrot.slane %v1241_v43, 4  ;;  %vm2288_vm13 = vcmask 261120   ;;  %v3163_v61 = vld [vmem:[#allocation2 + $0x48] sm:$0xff] }
 0x1c5   : > { %v2280_v13 = vpack.c.b16 %v2265_v23, %v2264_v36  ;;  %v1817_v20 = vshrl.u32 %v1660_v0, 16  ;;  %v2150_v17 = vunpack.c.l.b16 %v1643_v1  ;;  %v1249_v24 = vrot.slane %v1247_v62, 5 }
 0x1c6   : > { %v1234_v4 = vor.u32 %v1233_v42, %v1230_v38  ;;  %v1244_v21 = vor.u32 %v1243_v22, %v1239_v5  ;;  %v1820_v6 = vshll.u32 %v1660_v0, 16  ;;  %v2151_v18 = vunpack.c.l.b16 %v1646_v11  ;;  %v1865_v11 = vld [vmem:[#allocation2 + $0x24] sm:$0xe] }
 0x1c7   : > { %3132 = vmatmul.msk.bf16.vlgmr.msra.gmra.mxu3 %vm2288_vm13, %v2280_v13  ;;  %v1819_v40 = vrot.slane %v1817_v20, 4  ;;  %v1826_v41 = vshll.u32 %v3995_v12, 16  ;;  %v2046_v53 = vpack.c.b16 %v2037_v10, %v2036_v8  ;;  %v1830_v27 = vshrl.u32 %v3995_v12, 16  ;;  %v3242_v8 = vld [vmem:[#allocation2 + $0x1c] sm:$0xf] }
 0x1c8   : > { %2258 = vrot.lane.b32.xlu2 %v2245_v45, %s3295_s13  ;;  %v1235_v33 = vrot.slane %v1234_v4, 4  ;;  %v1245_v45 = vrot.slane %v1244_v21, 4  ;;  %v1822_v48 = vrot.slane %v1820_v6, 5  ;;  %v2947_v57 = vrot.slane %v1258_v25, 9  ;;  %v1662_v20 = vld [vmem:[#allocation2 + $0x6c] sm:$0xf] }
 0x1c9   : > { %v1337_v36 = vrot.slane %v3968_v37, 5  ;;  %v1828_v58 = vrot.slane %v1826_v41, 5  ;;  %v1832_v43 = vrot.slane %v1830_v27, 4  ;;  %v2159_v62 = vpack.c.b16 %v2151_v18, %v2150_v17 }
 0x1ca   : > { %v1240_v34 = vsel %vm3617_vm12, %v1235_v33, %v1239_v5  ;;  %v1250_v52 = vsel %vm3617_vm12, %v1245_v45, %v1249_v24  ;;  %v1823_v38 = vor.u32 %v1822_v48, %v1819_v40  ;;  %v1340_v0 = vrot.slane %v3976_v2, 5 }
 0x1cb   : > { %v1392_v23 = vshrl.u32 %v1345_v55, 16  ;;  %v1395_v37 = vshll.u32 %v1345_v55, 16  ;;  %v1401_v10 = vshll.u32 %v3242_v8, 16  ;;  %v1998_v22 = vunpack.c.l.b16 %v1240_v34 }
 0x1cc   : > { %2020 = vrot.lane.b32.xlu0 %v2006_v26, %s3293_s27  ;;  %2220 = vrot.lane.b32.xlu1 %v3172_v7, %s3294_s16  ;;  %v1836_v26 = vshll.u32 %v3998_v28, 16  ;;  %v1824_v42 = vrot.slane %v1823_v38, 4  ;;  %v1833_v7 = vor.u32 %v1832_v43, %v1828_v58  ;;  %v1999_v13 = vunpack.c.l.b16 %v1250_v52 }
 0x1cd   : > { %v4014_v5 = vsel %vm3597_vm9, %v2947_v57, %v1337_v36  ;;  %v1339_v4 = vrot.slane %v1337_v36, 4  ;;  %v1394_v24 = vrot.slane %v1392_v23, 4  ;;  %v1397_v25 = vrot.slane %v1395_v37, 5 }
 0x1ce   : > { %v1838_v1 = vrot.slane %v1836_v26, 5  ;;  %v1829_v2 = vsel %vm3617_vm12, %v1824_v42, %v1828_v58  ;;  %v1834_v21 = vrot.slane %v1833_v7, 4  ;;  %v2957_v18 = vrot.slane %v1865_v11, 9 }
 0x1cf   : > { %v2236_v6 = vunpack.c.l.b16 %v1829_v2  ;;  %v1905_v33 = vrot.slane %v3674_v35, 5  ;;  %v1908_v40 = vrot.slane %v3679_v46, 5  ;;  %v4027_v45 = vrot.slane %v1401_v10, 5  ;;  %v4033_v35 = vld [vmem:[#allocation2 + $0x70] sm:$0xf] }
 0x1d0   : > { %2106 = vrot.lane.b32.xlu2 %v3163_v61, %s3295_s13  ;;  %v4017_v17 = vpop.permute.xlu2 %2048  ;;  %v1839_v41 = vsel %vm3617_vm12, %v1834_v21, %v1838_v1  ;;  %v1407_v48 = vrot.slane %v1405_v32, 4  ;;  %v1841_v27 = vshrl.u32 %v1662_v20, 16  ;;  %v1844_v46 = vshll.u32 %v1662_v20, 16  ;;  %v4039_v32 = vld [vmem:[#allocation2 + $0x74] sm:$0x1] }
 0x1d1   : > { %v2237_v57 = vunpack.c.l.b16 %v1839_v41  ;;  %v1906_v36 = vsel %vm3597_vm9, %v2957_v18, %v1905_v33  ;;  %v1907_v58 = vrot.slane %v1905_v33, 4  ;;  %v2007_v26 = vpack.c.b16 %v1999_v13, %v1998_v22  ;;  %v1347_v21 = vld [vmem:[#allocation2 + $0x24] sm:$0xf] }
 0x1d2   : > { %v1398_v61 = vor.u32 %v1397_v25, %v1394_v24  ;;  %v2266_v34 = vunpack.c.l.b16 %v1906_v36  ;;  %v1843_v38 = vrot.slane %v1841_v27, 4  ;;  %v1846_v43 = vrot.slane %v1844_v46, 5  ;;  %v1866_v24 = vld [vmem:[#allocation2 + $0x30] sm:$0xe] }
 0x1d3   : > { %v2246_v52 = vpack.c.b16 %v2237_v57, %v2236_v6  ;;  %v1909_v49 = vsel %vm3597_vm9, %v1907_v58, %v1908_v40  ;;  %vm2313_vm14 = vcmask 523264   ;;  %v1408_v1 = vor.u32 %v1407_v48, %v4027_v45 }
 0x1d4   : > { %2174 = vrot.lane.b32.xlu0 %v2159_v62, %s3293_s27  ;;  %2060 = vrot.lane.b32.xlu1 %v2046_v53, %s3294_s16  ;;  %v1341_v53 = vsel %vm3597_vm9, %v1339_v4, %v1340_v0  ;;  %v3173_v62 = vld [vmem:[#allocation2 + $0x6c] sm:$0xff]  ;;  %v2267_v23 = vunpack.c.l.b16 %v1909_v49  ;;  %v1850_v42 = vshll.u32 %v4033_v35, 16  ;;  %v2038_v7 = vunpack.c.l.b16 %v4014_v5  ;;  %v3243_v5 = vld [vmem:[#allocation2 + $0x28] sm:$0xf] }
 0x1d5   : > { %v2039_v0 = vunpack.c.l.b16 %v1341_v53  ;;  %v1847_v37 = vor.u32 %v1846_v43, %v1843_v38  ;;  %v1854_v8 = vshrl.u32 %v4033_v35, 16  ;;  %v1399_v11 = vrot.slane %v1398_v61, 4 }
 0x1d6   : > { %v2161_v55 = vpop.permute.xlu0 %2160  ;;  %v2281_v22 = vpack.c.b16 %v2267_v23, %v2266_v34  ;;  %v1852_v13 = vrot.slane %v1850_v42, 5  ;;  %v1860_v4 = vshll.u32 %v4039_v32, 16  ;;  %v1429_v25 = vshrl.u32 %v3243_v5, 16 }
 0x1d7   : > { %v1848_v20 = vrot.slane %v1847_v37, 4  ;;  %v1856_v2 = vrot.slane %v1854_v8, 4  ;;  %vm2330_vm15 = vcmask 785408   ;;  %v1409_v6 = vrot.slane %v1408_v1, 4 }
 0x1d8   : > { %2260 = vrot.lane.b32.xlu2 %v2246_v52, %s3295_s13  ;;  %v4046_v10 = vpop.permute.xlu2 %2096  ;;  %v1413_v18 = vrot.slane %v1411_v15, 5  ;;  %3133 = vmatmul.msk.bf16.gmra.mxu3 %vm2288_vm13, %v2281_v22  ;;  %v2357_v33 = vsel %vm2288_vm13, %v2128_v56, %v2161_v55  ;;  %v2047_v41 = vpack.c.b16 %v2039_v0, %v2038_v7  ;;  %v1862_v27 = vrot.slane %v1860_v4, 5 }
 0x1d9   : > { %v1857_v48 = vor.u32 %v1856_v2, %v1852_v13  ;;  %v1404_v58 = vsel %vm3617_vm12, %v1399_v11, %v4027_v45  ;;  %v1416_v15 = vshrl.u32 %v1347_v21, 16  ;;  %v2958_v46 = vrot.slane %v1866_v24, 9 }
 0x1da   : > { %v1853_v29 = vsel %vm3617_vm12, %v1848_v20, %v1852_v13  ;;  %v1912_v56 = vrot.slane %v3710_v44, 5  ;;  %v1414_v55 = vsel %vm3617_vm12, %v1409_v6, %v1413_v18  ;;  %v1419_v53 = vshll.u32 %v1347_v21, 16  ;;  %v3244_v20 = vld [vmem:[#allocation2 + $0x2c] sm:$0x1] }
 0x1db   : > { %v1858_v30 = vrot.slane %v1857_v48, 4  ;;  %v1425_v61 = vshll.u32 %v3243_v5, 16  ;;  %v1915_v34 = vrot.slane %v3714_v59, 5  ;;  %v2114_v38 = vunpack.c.l.b16 %v1404_v58  ;;  %v1349_v48 = vld [vmem:[#allocation2 + $0x30] sm:$0xf] }
 0x1dc   : > { %2022 = vrot.lane.b32.xlu0 %v2007_v26, %s3293_s27  ;;  %2222 = vrot.lane.b32.xlu1 %v3173_v62, %s3294_s16  ;;  %v1913_v52 = vsel %vm3597_vm9, %v2958_v46, %v1912_v56  ;;  %v1914_v49 = vrot.slane %v1912_v56, 4  ;;  %v2238_v43 = vunpack.c.l.b16 %v1853_v29  ;;  %v3150_v62 = vld [vmem:[#allocation2] sm:$0xff]  ;;  %v2115_v1 = vunpack.c.l.b16 %v1414_v55  ;;  %v3245_v56 = vld [vmem:[#allocation2 + $0x34] sm:$0xf] }
 0x1dd   : > { %v1863_v45 = vsel %vm3617_vm12, %v1858_v30, %v1862_v27  ;;  %v1418_v23 = vrot.slane %v1416_v15, 4  ;;  %v1431_v42 = vrot.slane %v1429_v25, 4  ;;  %v1421_v0 = vrot.slane %v1419_v53, 5 }
 0x1de   : > { %v2209_v40 = vpop.permute.xlu0 %2208  ;;  %v2249_v57 = vpop.permute.xlu1 %2248  ;;  %v2239_v44 = vunpack.c.l.b16 %v1863_v45  ;;  %v1916_v7 = vsel %vm3597_vm9, %v1914_v49, %v1915_v34  ;;  %v1427_v37 = vrot.slane %v1425_v61, 5  ;;  %v2268_v8 = vunpack.c.l.b16 %v1913_v52  ;;  %v3151_v34 = vld [vmem:[#allocation2 + $0xc] sm:$0xff] }
 0x1df   : > { %v2380_v36 = vsel %vm2313_vm14, %v2357_v33, %v2209_v40  ;;  %v2269_v11 = vunpack.c.l.b16 %v1916_v7  ;;  %v1435_v2 = vshll.u32 %v3244_v20, 16  ;;  %v2129_v24 = vpack.c.b16 %v2115_v1, %v2114_v38 }
 0x1e0   : > { %v2396_v26 = vsel %vm2330_vm15, %v2380_v36, %v2249_v57  ;;  %2108 = vrot.lane.b32.xlu2 %v3164_v54, %s3295_s13  ;;  %v2247_v4 = vpack.c.b16 %v2239_v44, %v2238_v43  ;;  %v1422_v25 = vor.u32 %v1421_v0, %v1418_v23  ;;  %v1432_v6 = vor.u32 %v1431_v42, %v1427_v37 }
 0x1e1   : > { %2644 = vmatmul.bf16.vlgmr.msra.gmra.mxu2 %v2396_v26  ;;  %v2282_v18 = vpack.c.b16 %v2269_v11, %v2268_v8  ;;  %v1919_v40 = vrot.slane %v3747_v39, 5  ;;  %v1437_v54 = vrot.slane %v1435_v2, 5  ;;  %v3165_v39 = vld [vmem:[#allocation2 + $0x60] sm:$0xff]  ;;  %v1440_v29 = vshrl.u32 %v1349_v48, 16 }
 0x1e2   : > { %v2251_v59 = vpop.permute.xlu2 %2250  ;;  %v1423_v36 = vrot.slane %v1422_v25, 4  ;;  %v1433_v58 = vrot.slane %v1432_v6, 4  ;;  %v1443_v30 = vshll.u32 %v1349_v48, 16  ;;  %v1453_v55 = vshrl.u32 %v3245_v56, 16 }
 0x1e3   : > { %v1921_v46 = vrot.slane %v1919_v40, 4  ;;  %v1449_v49 = vshll.u32 %v3245_v56, 16  ;;  %v1442_v43 = vrot.slane %v1440_v29, 4  ;;  %v1926_v25 = vrot.slane %v3800_v19, 5  ;;  %v3152_v56 = vld [vmem:[#allocation2 + $0x18] sm:$0xff] }
 0x1e4   : > { %2062 = vrot.lane.b32.xlu1 %v2047_v41, %s3294_s16  ;;  %v1867_v41 = vld [vmem:[#allocation2 + $0x3c] sm:$0xe]  ;;  %v1428_v45 = vsel %vm3617_vm12, %v1423_v36, %v1427_v37  ;;  %v1438_v52 = vsel %vm3617_vm12, %v1433_v58, %v1437_v54  ;;  %v1445_v44 = vrot.slane %v1443_v30, 5  ;;  %v1455_v23 = vrot.slane %v1453_v55, 4 }
 0x1e5   : > { %v2959_v15 = vrot.slane %v1867_v41, 9  ;;  %v2117_v1 = vunpack.c.l.b16 %v1438_v52  ;;  %v1928_v54 = vrot.slane %v1926_v25, 4  ;;  %vm2734_vm0 = vcmask 64512  }
 0x1e6   : > { %v2163_v22 = vpop.permute.xlu0 %2162  ;;  %v2009_v13 = vpop.permute.xlu1 %2008 }
 0x1e7   : > { %v2291_v21 = vsel %vm2288_vm13, %v3150_v62, %v2009_v13  ;;  %v2360_v27 = vsel %vm2288_vm13, %v2129_v24, %v2163_v22  ;;  %v2116_v62 = vunpack.c.l.b16 %v1428_v45  ;;  %v1446_v22 = vor.u32 %v1445_v44, %v1442_v43  ;;  %v3246_v13 = vld [vmem:[#allocation2 + $0x38] sm:$0x1] }
 0x1e8   : > { %v2315_v5 = vsel %vm2313_vm14, %v2291_v21, %v4017_v17  ;;  %2262 = vrot.lane.b32.xlu2 %v2247_v4, %s3295_s13  ;;  %3134 = vmatmul.msk.bf16.gmra.mxu3 %vm2288_vm13, %v2282_v18  ;;  %v1459_v4 = vshll.u32 %v3246_v13, 16  ;;  %v1868_v18 = vld [vmem:[#allocation2 + $0x48] sm:$0xe]  ;;  %v1933_v13 = vrot.slane %v3875_v51, 5 }
 0x1e9   : > { %v2332_v33 = vsel %vm2330_vm15, %v2315_v5, %v4046_v10  ;;  %v1922_v10 = vrot.slane %v3750_v9, 5  ;;  %v1920_v9 = vsel %vm3597_vm9, %v2959_v15, %v1919_v40  ;;  %v2130_v21 = vpack.c.b16 %v2117_v1, %v2116_v62 }
 0x1ea   : > { %2595 = vmatmul.bf16.vlgmr.msra.gmra.mxu1 %v2332_v33  ;;  %v2099_v57 = vpop.permute.xlu2 %2098  ;;  %v2270_v0 = vunpack.c.l.b16 %v1920_v9  ;;  %v1447_v6 = vrot.slane %v1446_v22, 4  ;;  %v1461_v48 = vrot.slane %v1459_v4, 5  ;;  %v2960_v58 = vrot.slane %v1868_v18, 9  ;;  %v1869_v4 = vld [vmem:[#allocation2 + $0x54] sm:$0xe] }
 0x1eb   : > { %v1923_v38 = vsel %vm3597_vm9, %v1921_v46, %v1922_v10  ;;  %v2961_v18 = vrot.slane %v1869_v4, 9 }
 0x1ec   : > { %v2271_v37 = vunpack.c.l.b16 %v1923_v38 }
 0x1ee   : > { %v2011_v17 = vpop.permute.xlu0 %2010  ;;  %v2211_v26 = vpop.permute.xlu1 %2210  ;;  %v2283_v5 = vpack.c.b16 %v2271_v37, %v2270_v0 }
 0x1ef   : > { %v2382_v53 = vsel %vm2313_vm14, %v2360_v27, %v2211_v26  ;;  %v2294_v42 = vsel %vm2288_vm13, %v3151_v34, %v2011_v17  ;;  %v1351_v27 = vld [vmem:[#allocation2 + $0x3c] sm:$0xf]  ;;  %v3247_v26 = vld [vmem:[#allocation2 + $0x40] sm:$0xf] }
 0x1f0   : > { %v2399_v61 = vsel %vm2330_vm15, %v2382_v53, %v2251_v59  ;;  %2110 = vrot.lane.b32.xlu2 %v3165_v39, %s3295_s13  ;;  %v1451_v59 = vrot.slane %v1449_v49, 5  ;;  %v1464_v46 = vshrl.u32 %v1351_v27, 16  ;;  %v1467_v10 = vshll.u32 %v1351_v27, 16 }
 0x1f1   : > { %2649 = vmatmul.bf16.gmra.mxu2 %v2399_v61  ;;  %v1473_v39 = vshll.u32 %v3247_v26, 16  ;;  %v1477_v29 = vshrl.u32 %v3247_v26, 16 }
 0x1f2   : > { %v2253_v7 = vpop.permute.xlu2 %2252  ;;  %v1456_v24 = vor.u32 %v1455_v23, %v1451_v59  ;;  %v1452_v19 = vsel %vm3617_vm12, %v1447_v6, %v1451_v59  ;;  %v1466_v45 = vrot.slane %v1464_v46, 4  ;;  %v1469_v52 = vrot.slane %v1467_v10, 5 }
 0x1f3   : > { %v2118_v61 = vunpack.c.l.b16 %v1452_v19  ;;  %v1475_v49 = vrot.slane %v1473_v39, 5  ;;  %v1479_v43 = vrot.slane %v1477_v29, 4 }
 0x1f4   : > { %v1457_v41 = vrot.slane %v1456_v24, 4 }
 0x1f6   : > { %v2165_v8 = vpop.permute.xlu0 %2164  ;;  %v2051_v11 = vpop.permute.xlu1 %2050  ;;  %v1462_v55 = vsel %vm3617_vm12, %v1457_v41, %v1461_v48 }
 0x1f7   : > { %v2317_v20 = vsel %vm2313_vm14, %v2294_v42, %v2051_v11  ;;  %v2363_v33 = vsel %vm2288_vm13, %v2130_v21, %v2165_v8  ;;  %v2119_v34 = vunpack.c.l.b16 %v1462_v55  ;;  %v3248_v42 = vld [vmem:[#allocation2 + $0x44] sm:$0x1]  ;;  %v1470_v8 = vor.u32 %v1469_v52, %v1466_v45 }
 0x1f8   : > { %v2335_v2 = vsel %vm2330_vm15, %v2317_v20, %v2099_v57  ;;  %3135 = vmatmul.msk.bf16.gmra.mxu3 %vm2288_vm13, %v2283_v5  ;;  %v1929_v57 = vrot.slane %v3806_v31, 5  ;;  %v1927_v31 = vsel %vm3597_vm9, %v2960_v58, %v1926_v25  ;;  %v1480_v11 = vor.u32 %v1479_v43, %v1475_v49  ;;  %v1353_v20 = vld [vmem:[#allocation2 + $0x48] sm:$0xf] }
 0x1f9   : > { %v2272_v44 = vunpack.c.l.b16 %v1927_v31  ;;  %v2131_v0 = vpack.c.b16 %v2119_v34, %v2118_v61  ;;  %v1471_v24 = vrot.slane %v1470_v8, 4  ;;  %v1488_v48 = vshrl.u32 %v1353_v20, 16 }
 0x1fa   : > { %2600 = vmatmul.bf16.gmra.mxu1 %v2335_v2  ;;  %v2101_v40 = vpop.permute.xlu2 %2100  ;;  %v1930_v53 = vsel %vm3597_vm9, %v1928_v54, %v1929_v57  ;;  %v1481_v5 = vrot.slane %v1480_v11, 4  ;;  %v1491_v27 = vshll.u32 %v1353_v20, 16  ;;  %v1355_v11 = vld [vmem:[#allocation2 + $0x54] sm:$0xf]  ;;  %v1943_v20 = vrot.slane %v3998_v28, 5 }
 0x1fb   : > { %v2273_v62 = vunpack.c.l.b16 %v1930_v53  ;;  %v1476_v19 = vsel %vm3617_vm12, %v1471_v24, %v1475_v49  ;;  %v1490_v10 = vrot.slane %v1488_v48, 4  ;;  %v3250_v49 = vld [vmem:[#allocation2 + $0x50] sm:$0x1]  ;;  %v1512_v24 = vshrl.u32 %v1355_v11, 16 }
 0x1fc   : > { %v1493_v26 = vrot.slane %v1491_v27, 5  ;;  %v2120_v39 = vunpack.c.l.b16 %v1476_v19 }
 0x1fd   : > { %v2284_v22 = vpack.c.b16 %v2273_v62, %v2272_v44 }
 0x1fe   : > { %v2013_v36 = vpop.permute.xlu0 %2012  ;;  %v2213_v17 = vpop.permute.xlu1 %2212  ;;  %v1494_v52 = vor.u32 %v1493_v26, %v1490_v10 }
 0x1ff   : > { %v2384_v15 = vsel %vm2313_vm14, %v2363_v33, %v2213_v17  ;;  %v2297_v9 = vsel %vm2288_vm13, %v3152_v56, %v2013_v36  ;;  %v1935_v33 = vrot.slane %v1933_v13, 4  ;;  %v3249_v36 = vld [vmem:[#allocation2 + $0x4c] sm:$0xf]  ;;  %v3153_v17 = vld [vmem:[#allocation2 + $0x24] sm:$0xff] }
 0x200   : > { %v2402_v30 = vsel %vm2330_vm15, %v2384_v15, %v2253_v7  ;;  %v1483_v7 = vshll.u32 %v3248_v42, 16  ;;  %v1497_v58 = vshll.u32 %v3249_v36, 16  ;;  %v1501_v54 = vshrl.u32 %v3249_v36, 16 }
 0x201   : > { %2654 = vmatmul.bf16.gmra.mxu2 %v2402_v30  ;;  %v1495_v42 = vrot.slane %v1494_v52, 4 }
 0x202   : > { %v2255_v38 = vpop.permute.xlu2 %2254  ;;  %v1485_v25 = vrot.slane %v1483_v7, 5  ;;  %v1499_v30 = vrot.slane %v1497_v58, 5  ;;  %v1503_v31 = vrot.slane %v1501_v54, 4  ;;  %v1870_v7 = vld [vmem:[#allocation2 + $0x60] sm:$0xe] }
 0x204   : > { %v1486_v15 = vsel %vm3617_vm12, %v1481_v5, %v1485_v25  ;;  %v1504_v62 = vor.u32 %v1503_v31, %v1499_v30  ;;  %v1515_v5 = vshll.u32 %v1355_v11, 16  ;;  %v1521_v25 = vshll.u32 %v3818_v47, 16  ;;  %v1871_v31 = vld [vmem:[#allocation2 + $0x6c] sm:$0xe] }
 0x205   : > { %v2121_v29 = vunpack.c.l.b16 %v1486_v15 }
 0x206   : > { %v2167_v1 = vpop.permute.xlu0 %2166  ;;  %v2053_v23 = vpop.permute.xlu1 %2052  ;;  %v1517_v36 = vrot.slane %v1515_v5, 5  ;;  %v1523_v58 = vrot.slane %v1521_v25, 5 }
 0x207   : > { %v2319_v59 = vsel %vm2313_vm14, %v2297_v9, %v2053_v23  ;;  %v2366_v2 = vsel %vm2288_vm13, %v2131_v0, %v2167_v1  ;;  %v1507_v9 = vshll.u32 %v3250_v49, 16  ;;  %v2132_v44 = vpack.c.b16 %v2121_v29, %v2120_v39  ;;  %v1357_v49 = vld [vmem:[#allocation2 + $0x60] sm:$0xf] }
 0x208   : > { %v2338_v37 = vsel %vm2330_vm15, %v2319_v59, %v2101_v40  ;;  %3136 = vmatmul.msk.bf16.gmra.mxu3 %vm2288_vm13, %v2284_v22  ;;  %v1936_v40 = vrot.slane %v3898_v63, 5  ;;  %v1934_v63 = vsel %vm3597_vm9, %v2961_v18, %v1933_v13  ;;  %v1940_v23 = vrot.slane %v3995_v12, 5 }
 0x209   : > { %v2274_v53 = vunpack.c.l.b16 %v1934_v63  ;;  %v1509_v8 = vrot.slane %v1507_v9, 5  ;;  %v2962_v13 = vrot.slane %v1870_v7, 9  ;;  %v1500_v12 = vsel %vm3617_vm12, %v1495_v42, %v1499_v30 }
 0x20a   : > { %2605 = vmatmul.bf16.gmra.mxu1 %v2338_v37  ;;  %v2103_v21 = vpop.permute.xlu2 %2102  ;;  %v1937_v46 = vsel %vm3597_vm9, %v1935_v33, %v1936_v40  ;;  %v1505_v37 = vrot.slane %v1504_v62, 4  ;;  %v1942_v4 = vrot.slane %v1940_v23, 4  ;;  %v3154_v33 = vld [vmem:[#allocation2 + $0x30] sm:$0xff]  ;;  %v2122_v48 = vunpack.c.l.b16 %v1500_v12 }
 0x20b   : > { %v2275_v61 = vunpack.c.l.b16 %v1937_v46  ;;  %v1941_v28 = vsel %vm3597_vm9, %v2962_v13, %v1940_v23  ;;  %v1531_v46 = vshll.u32 %v3835_v60, 16  ;;  %v2963_v9 = vrot.slane %v1871_v31, 9  ;;  %v3155_v23 = vld [vmem:[#allocation2 + $0x3c] sm:$0xff] }
 0x20c   : > { %v1510_v40 = vsel %vm3617_vm12, %v1505_v37, %v1509_v8  ;;  %v1549_v62 = vshrl.u32 %v3928_v14, 16  ;;  %v1545_v37 = vshll.u32 %v3928_v14, 16 }
 0x20d   : > { %v2285_v1 = vpack.c.b16 %v2275_v61, %v2274_v53  ;;  %v2123_v27 = vunpack.c.l.b16 %v1510_v40  ;;  %v1555_v40 = vshll.u32 %v3951_v3, 16 }
 0x20e   : > { %v2015_v6 = vpop.permute.xlu0 %2014  ;;  %v2215_v41 = vpop.permute.xlu1 %2214  ;;  %v1551_v5 = vrot.slane %v1549_v62, 4 }
 0x20f   : > { %v2386_v51 = vsel %vm2313_vm14, %v2366_v2, %v2215_v41  ;;  %v2300_v56 = vsel %vm2288_vm13, %v3153_v17, %v2015_v6  ;;  %v1525_v6 = vshrl.u32 %v3818_v47, 16  ;;  %v1944_v41 = vsel %vm3597_vm9, %v1942_v4, %v1943_v20 }
 0x210   : > { %v2405_v57 = vsel %vm2330_vm15, %v2386_v51, %v2255_v38  ;;  %v1514_v51 = vrot.slane %v1512_v24, 4  ;;  %v2276_v17 = vunpack.c.l.b16 %v1941_v28  ;;  %v2277_v19 = vunpack.c.l.b16 %v1944_v41 }
 0x211   : > { %2659 = vmatmul.bf16.gmra.mxu2 %v2405_v57  ;;  %v1527_v57 = vrot.slane %v1525_v6, 4  ;;  %v2133_v26 = vpack.c.b16 %v2123_v27, %v2122_v48  ;;  %v1547_v24 = vrot.slane %v1545_v37, 5 }
 0x212   : > { %v2257_v55 = vpop.permute.xlu2 %2256  ;;  %v1518_v29 = vor.u32 %v1517_v36, %v1514_v51 }
 0x213   : > { %v1528_v30 = vor.u32 %v1527_v57, %v1523_v58  ;;  %v1552_v41 = vor.u32 %v1551_v5, %v1547_v24 }
 0x214   : > { %v1519_v61 = vrot.slane %v1518_v29, 4 }
 0x215   : > { %v1553_v36 = vrot.slane %v1552_v41, 4 }
 0x216   : > { %v2169_v34 = vpop.permute.xlu0 %2168  ;;  %v2055_v45 = vpop.permute.xlu1 %2054  ;;  %v1524_v42 = vsel %vm3617_vm12, %v1519_v61, %v1523_v58  ;;  %v1557_v58 = vrot.slane %v1555_v40, 5 }
 0x217   : > { %v2321_v38 = vsel %vm2313_vm14, %v2300_v56, %v2055_v45  ;;  %v2369_v59 = vsel %vm2288_vm13, %v2132_v44, %v2169_v34  ;;  %v2286_v56 = vpack.c.b16 %v2277_v19, %v2276_v17  ;;  %v1529_v34 = vrot.slane %v1528_v30, 4  ;;  %v3156_v17 = vld [vmem:[#allocation2 + $0x48] sm:$0xff] }
 0x218   : > { %v2341_v43 = vsel %vm2330_vm15, %v2321_v38, %v2103_v21  ;;  %3137 = vmatmul.msk.bf16.gmra.mxu3 %vm2288_vm13, %v2285_v1  ;;  %v1533_v45 = vrot.slane %v1531_v46, 5  ;;  %v2124_v11 = vunpack.c.l.b16 %v1524_v42 }
 0x21a   : > { %2610 = vmatmul.bf16.gmra.mxu1 %v2341_v43  ;;  %v2105_v0 = vpop.permute.xlu2 %2104  ;;  %v1950_v43 = vrot.slane %v4039_v32, 5  ;;  %v1534_v7 = vsel %vm3617_vm12, %v1529_v34, %v1533_v45  ;;  %v3157_v45 = vld [vmem:[#allocation2 + $0x54] sm:$0xff] }
 0x21b   : > { %v2125_v13 = vunpack.c.l.b16 %v1534_v7 }
 0x21e   : > { %v2017_v22 = vpop.permute.xlu0 %2016  ;;  %v2217_v2 = vpop.permute.xlu1 %2216 }
 0x21f   : > { %v2388_v21 = vsel %vm2313_vm14, %v2369_v59, %v2217_v2  ;;  %v2303_v47 = vsel %vm2288_vm13, %v3154_v33, %v2017_v22  ;;  %v1536_v59 = vshrl.u32 %v1357_v49, 16  ;;  %v2134_v33 = vpack.c.b16 %v2125_v13, %v2124_v11 }
 0x220   : > { %v2408_v18 = vsel %vm2330_vm15, %v2388_v21, %v2257_v55  ;;  %v1947_v55 = vrot.slane %v4033_v35, 5 }
 0x221   : > { %2664 = vmatmul.bf16.gmra.mxu2 %v2408_v18  ;;  %v1538_v12 = vrot.slane %v1536_v59, 4 }
 0x222   : > { %v2259_v54 = vpop.permute.xlu2 %2258  ;;  %v1949_v38 = vrot.slane %v1947_v55, 4  ;;  %v1948_v32 = vsel %vm3597_vm9, %v2963_v9, %v1947_v55 }
 0x223   : > { %v2278_v4 = vunpack.c.l.b16 %v1948_v32 }
 0x224   : > { %v1951_v8 = vsel %vm3597_vm9, %v1949_v38, %v1950_v43 }
 0x225   : > { %v2279_v20 = vunpack.c.l.b16 %v1951_v8 }
 0x226   : > { %v2171_v15 = vpop.permute.xlu0 %2170  ;;  %v2057_v63 = vpop.permute.xlu1 %2056 }
 0x227   : > { %v2323_v10 = vsel %vm2313_vm14, %v2303_v47, %v2057_v63  ;;  %v2372_v53 = vsel %vm2288_vm13, %v2133_v26, %v2171_v15  ;;  %v2287_v16 = vpack.c.b16 %v2279_v20, %v2278_v4  ;;  %v1558_v15 = vsel %vm3617_vm12, %v1553_v36, %v1557_v58 }
 0x228   : > { %v2344_v39 = vsel %vm2330_vm15, %v2323_v10, %v2105_v0  ;;  %3138 = vmatmul.msk.bf16.gmra.mxu3 %vm2288_vm13, %v2286_v56  ;;  %v1539_v0 = vshll.u32 %v1357_v49, 16  ;;  %v2127_v10 = vunpack.c.l.b16 %v1558_v15 }
 0x22a   : > { %2615 = vmatmul.bf16.gmra.mxu1 %v2344_v39  ;;  %v2107_v52 = vpop.permute.xlu2 %2106  ;;  %v1541_v21 = vrot.slane %v1539_v0, 5 }
 0x22c   : > { %v1542_v28 = vor.u32 %v1541_v21, %v1538_v12 }
 0x22e   : > { %v2019_v60 = vpop.permute.xlu0 %2018  ;;  %v2219_v44 = vpop.permute.xlu1 %2218  ;;  %v1543_v51 = vrot.slane %v1542_v28, 4 }
 0x22f   : > { %v2390_v35 = vsel %vm2313_vm14, %v2372_v53, %v2219_v44  ;;  %v2306_v22 = vsel %vm2288_vm13, %v3155_v23, %v2019_v60 }
 0x230   : > { %v2411_v1 = vsel %vm2330_vm15, %v2390_v35, %v2259_v54  ;;  %v1548_v3 = vsel %vm3617_vm12, %v1543_v51, %v1547_v24 }
 0x231   : > { %2669 = vmatmul.bf16.gmra.mxu2 %v2411_v1  ;;  %v2126_v46 = vunpack.c.l.b16 %v1548_v3 }
 0x232   : > { %v2261_v6 = vpop.permute.xlu2 %2260 }
 0x233   : > { %v2135_v56 = vpack.c.b16 %v2127_v10, %v2126_v46 }
 0x236   : > { %v2173_v2 = vpop.permute.xlu0 %2172  ;;  %v2059_v25 = vpop.permute.xlu1 %2058 }
 0x237   : > { %v2325_v14 = vsel %vm2313_vm14, %v2306_v22, %v2059_v25  ;;  %v2375_v48 = vsel %vm2288_vm13, %v2134_v33, %v2173_v2 }
 0x238   : > { %v2347_v18 = vsel %vm2330_vm15, %v2325_v14, %v2107_v52  ;;  %3139 = vmatmul.msk.bf16.gmra.mxu3 %vm2288_vm13, %v2287_v16 }
 0x23a   : > { %2620 = vmatmul.bf16.gmra.mxu1 %v2347_v18  ;;  %v2109_v19 = vpop.permute.xlu2 %2108 }
 0x23e   : > { %v2021_v27 = vpop.permute.xlu0 %2020  ;;  %v2221_v47 = vpop.permute.xlu1 %2220 }
 0x23f   : > { %v2392_v54 = vsel %vm2313_vm14, %v2375_v48, %v2221_v47  ;;  %v2309_v63 = vsel %vm2288_vm13, %v3156_v17, %v2021_v27 }
 0x240   : > { %v2414_v57 = vsel %vm2330_vm15, %v2392_v54, %v2261_v6 }
 0x241   : > { %2674 = vmatmul.bf16.gmra.mxu2 %v2414_v57 }
 0x242   : > { %v2263_v55 = vpop.permute.xlu2 %2262 }
 0x246   : > { %v2061_v26 = vpop.permute.xlu1 %2060  ;;  %v2175_v29 = vpop.permute.xlu0 %2174 }
 0x247   : > { %v2327_v39 = vsel %vm2313_vm14, %v2309_v63, %v2061_v26  ;;  %v2378_v31 = vsel %vm2288_vm13, %v2135_v56, %v2175_v29 }
 0x248   : > { %v2350_v30 = vsel %vm2330_vm15, %v2327_v39, %v2109_v19 }
 0x24a   : > { %2625 = vmatmul.bf16.gmra.mxu1 %v2350_v30  ;;  %v2694_v61 = vpop.f32.mrf.mxu3  ;;  %v2111_v49 = vpop.permute.xlu2 %2110 }
 0x24e   : > { %v2223_v53 = vpop.permute.xlu1 %2222  ;;  %v2023_v60 = vpop.permute.xlu0 %2022 }
 0x24f   : > { %v2394_v50 = vsel %vm2313_vm14, %v2378_v31, %v2223_v53  ;;  %v2312_v52 = vsel %vm2288_vm13, %v3157_v45, %v2023_v60 }
 0x250   : > { %v2417_v34 = vsel %vm2330_vm15, %v2394_v50, %v2263_v55 }
 0x251   : > { %2679 = vmatmul.bf16.gmra.mxu2 %v2417_v34 }
 0x252   : > { %v2696_v38 = vpop.f32.mrf.mxu3 }
 0x256   : > { %v2063_v9 = vpop.permute.xlu1 %2062 }
 0x257   : > { %v2329_v43 = vsel %vm2313_vm14, %v2312_v52, %v2063_v9 }
 0x258   : > { %v2353_v44 = vsel %vm2330_vm15, %v2329_v43, %v2111_v49 }
 0x25a   : > { %2630 = vmatmul.bf16.gmra.mxu1 %v2353_v44 }
 0x25b   : > { %v2699_v62 = vpop.f32.mrf.mxu3 }
 0x263   : > { %v2701_v42 = vpop.f32.mrf.mxu3 }
 0x264   : > { %v2645_v35 = vpop.f32.mrf.mxu2 }
 0x267   : > { %v2596_v1 = vpop.f32.mrf.mxu1 }
 0x268   : > { %v2646_v23 = vadd.f32 %v2645_v35, %v2596_v1 }
 0x26a   : > { %v2695_v7 = vadd.f32 %v2694_v61, %v2646_v23 }
 0x26b   : > { %v2704_v8 = vpop.f32.mrf.mxu3 }
 0x26c   : > { %v2647_v59 = vpop.f32.mrf.mxu2  ;;  %2735 = vst.msk [vmem:[%s3402_s18] sm:$0xff] %vm2734_vm0, %v2695_v7 }
 0x26f   : > { %v2598_v0 = vpop.f32.mrf.mxu1 }
 0x270   : > { %v2648_v37 = vadd.f32 %v2647_v59, %v2598_v0 }
 0x272   : > { %v2697_v32 = vadd.f32 %v2696_v38, %v2648_v37 }
 0x273   : > { %v2706_v2 = vpop.f32.mrf.mxu3 }
 0x274   : > { %2736 = vst.msk [vmem:[%s3402_s18 + $0x8] sm:$0xff] %vm2734_vm0, %v2697_v32  ;;  %v2650_v11 = vpop.f32.mrf.mxu2 }
 0x277   : > { %v2601_v22 = vpop.f32.mrf.mxu1 }
 0x278   : > { %v2651_v13 = vadd.f32 %v2650_v11, %v2601_v22 }
 0x27a   : > { %v2700_v4 = vadd.f32 %v2699_v62, %v2651_v13 }
 0x27b   : > { %v2709_v14 = vpop.f32.mrf.mxu3 }
 0x27c   : > { %2737 = vst.msk [vmem:[%s3402_s18 + $0x10] sm:$0xff] %vm2734_vm0, %v2700_v4  ;;  %v2652_v20 = vpop.f32.mrf.mxu2 }
 0x27f   : > { %v2603_v12 = vpop.f32.mrf.mxu1 }
 0x280   : > { %v2653_v21 = vadd.f32 %v2652_v20, %v2603_v12 }
 0x282   : > { %v2702_v24 = vadd.f32 %v2701_v42, %v2653_v21 }
 0x283   : > { %v2711_v28 = vpop.f32.mrf.mxu3 }
 0x284   : > { %2738 = vst.msk [vmem:[%s3402_s18 + $0x18] sm:$0xff] %vm2734_vm0, %v2702_v24  ;;  %v2655_v5 = vpop.f32.mrf.mxu2 }
 0x287   : > { %v2606_v25 = vpop.f32.mrf.mxu1 }
 0x288   : > { %v2656_v6 = vadd.f32 %v2655_v5, %v2606_v25 }
 0x28a   : > { %v2705_v18 = vadd.f32 %v2704_v8, %v2656_v6 }
 0x28b   : > { %v2714_v58 = vpop.f32.mrf.mxu3 }
 0x28c   : > { %2739 = vst.msk [vmem:[%s3402_s18 + $0x20] sm:$0xff] %vm2734_vm0, %v2705_v18  ;;  %v2657_v33 = vpop.f32.mrf.mxu2 }
 0x28f   : > { %v2608_v16 = vpop.f32.mrf.mxu1 }
 0x290   : > { %v2658_v40 = vadd.f32 %v2657_v33, %v2608_v16 }
 0x292   : > { %v2707_v41 = vadd.f32 %v2706_v2, %v2658_v40 }
 0x293   : > { %v2716_v3 = vpop.f32.mrf.mxu3 }
 0x294   : > { %2740 = vst.msk [vmem:[%s3402_s18 + $0x28] sm:$0xff] %vm2734_vm0, %v2707_v41  ;;  %v2660_v48 = vpop.f32.mrf.mxu2 }
 0x297   : > { %v2611_v27 = vpop.f32.mrf.mxu1 }
 0x298   : > { %v2661_v51 = vadd.f32 %v2660_v48, %v2611_v27 }
 0x29a   : > { %v2710_v36 = vadd.f32 %v2709_v14, %v2661_v51 }
 0x29b   : > { %v2719_v39 = vpop.f32.mrf.mxu3 }
 0x29c   : > { %2741 = vst.msk [vmem:[%s3402_s18 + $0x30] sm:$0xff] %vm2734_vm0, %v2710_v36  ;;  %v2662_v47 = vpop.f32.mrf.mxu2 }
 0x29f   : > { %v2613_v54 = vpop.f32.mrf.mxu1 }
 0x2a0   : > { %v2663_v57 = vadd.f32 %v2662_v47, %v2613_v54 }
 0x2a2   : > { %v2712_v17 = vadd.f32 %v2711_v28, %v2663_v57 }
 0x2a3   : > { %v2721_v53 = vpop.f32.mrf.mxu3 }
 0x2a4   : > { %2742 = vst.msk [vmem:[%s3402_s18 + $0x38] sm:$0xff] %vm2734_vm0, %v2712_v17  ;;  %v2665_v19 = vpop.f32.mrf.mxu2 }
 0x2a7   : > { %v2616_v15 = vpop.f32.mrf.mxu1 }
 0x2a8   : > { %v2666_v63 = vadd.f32 %v2665_v19, %v2616_v15 }
 0x2aa   : > { %v2715_v46 = vadd.f32 %v2714_v58, %v2666_v63 }
 0x2ab   : > { %v2724_v52 = vpop.f32.mrf.mxu3 }
 0x2ac   : > { %2743 = vst.msk [vmem:[%s3402_s18 + $0x40] sm:$0xff] %vm2734_vm0, %v2715_v46  ;;  %v2667_v10 = vpop.f32.mrf.mxu2 }
 0x2af   : > { %v2618_v26 = vpop.f32.mrf.mxu1 }
 0x2b0   : > { %v2668_v29 = vadd.f32 %v2667_v10, %v2618_v26 }
 0x2b2   : > { %v2717_v30 = vadd.f32 %v2716_v3, %v2668_v29 }
 0x2b3   : > { %v2726_v62 = vpop.f32.mrf.mxu3 }
 0x2b4   : > { %2744 = vst.msk [vmem:[%s3402_s18 + $0x48] sm:$0xff] %vm2734_vm0, %v2717_v30  ;;  %v2670_v56 = vpop.f32.mrf.mxu2 }
 0x2b7   : > { %v2621_v55 = vpop.f32.mrf.mxu1 }
 0x2b8   : > { %v2671_v31 = vadd.f32 %v2670_v56, %v2621_v55 }
 0x2ba   : > { %v2720_v61 = vadd.f32 %v2719_v39, %v2671_v31 }
 0x2bb   : > { %v2729_v7 = vpop.f32.mrf.mxu3 }
 0x2bc   : > { %2745 = vst.msk [vmem:[%s3402_s18 + $0x50] sm:$0xff] %vm2734_vm0, %v2720_v61  ;;  %v2672_v50 = vpop.f32.mrf.mxu2 }
 0x2bf   : > { %v2623_v34 = vpop.f32.mrf.mxu1 }
 0x2c0   : > { %v2673_v45 = vadd.f32 %v2672_v50, %v2623_v34 }
 0x2c2   : > { %v2722_v60 = vadd.f32 %v2721_v53, %v2673_v45 }
 0x2c3   : > { %v2731_v22 = vpop.f32.mrf.mxu3 }
 0x2c4   : > { %2746 = vst.msk [vmem:[%s3402_s18 + $0x58] sm:$0xff] %vm2734_vm0, %v2722_v60  ;;  %v2675_v49 = vpop.f32.mrf.mxu2 }
 0x2c7   : > { %v2626_v9 = vpop.f32.mrf.mxu1 }
 0x2c8   : > { %v2676_v38 = vadd.f32 %v2675_v49, %v2626_v9 }
 0x2ca   : > { %v2725_v43 = vadd.f32 %v2724_v52, %v2676_v38 }
 0x2cc   : > { %2747 = vst.msk [vmem:[%s3402_s18 + $0x60] sm:$0xff] %vm2734_vm0, %v2725_v43  ;;  %v2677_v44 = vpop.f32.mrf.mxu2 }
 0x2cf   : > { %v2628_v35 = vpop.f32.mrf.mxu1 }
 0x2d0   : > { %v2678_v1 = vadd.f32 %v2677_v44, %v2628_v35 }
 0x2d2   : > { %v2727_v23 = vadd.f32 %v2726_v62, %v2678_v1 }
 0x2d4   : > { %2748 = vst.msk [vmem:[%s3402_s18 + $0x68] sm:$0xff] %vm2734_vm0, %v2727_v23  ;;  %v2680_v42 = vpop.f32.mrf.mxu2 }
 0x2d7   : > { %v2631_v59 = vpop.f32.mrf.mxu1 }
 0x2d8   : > { %v2681_v0 = vadd.f32 %v2680_v42, %v2631_v59 }
 0x2da   : > { %v2730_v37 = vadd.f32 %v2729_v7, %v2681_v0 }
 0x2dc   : > { %2749 = vst.msk [vmem:[%s3402_s18 + $0x70] sm:$0xff] %vm2734_vm0, %v2730_v37  ;;  %v2682_v32 = vpop.f32.mrf.mxu2 }
 0x2df   : > { %v2633_v8 = vpop.f32.mrf.mxu1 }
 0x2e0   : > { %v2683_v11 = vadd.f32 %v2682_v32, %v2633_v8 }
 0x2e2   : > { %v2732_v13 = vadd.f32 %v2731_v22, %v2683_v11 }
 0x2e4   : > { %2750 = vst.msk [vmem:[%s3402_s18 + $0x78] sm:$0xff] %vm2734_vm0, %v2732_v13 }
 0x2e5 PF: > { %s18_s9 = sadd.s32 1, %s3289_s9   ;;  %s4256_s27 = smov %s3281_s29 }
 0x2e6   : > { %p15_p12 = scmp.ge.s32.totalorder %s18_s9, 6   ;;  %s4257_s28 = smov %s3285_s30 }
 0x2e7   : > { %s4258_s29 = smov %s4261_s10  ;;  %s4259_s30 = smov %s4265_s11 }
 0x2e8   :  { %17 = sbr.rel (!%p15_p12) target bundleno = 3 (0x3), region = 99 }

</bundles_post_ra>
